<compile_context>
chip_gen: v7x
topology: tpu7x:2x2x1
jax: 0.10.0
libtpu: 0.0.40
codegen_flags: <defaults>
</compile_context>

<pallas_src>
import jax
import jax.numpy as jnp
import numpy as np
from jax import lax
from jax.experimental import pallas as pl
from jax.experimental.pallas import tpu as pltpu

# ---- static problem sizes (small, consistent with the module) --------------
BATCH = 2                      # batch
L = 8                          # sequence length
D_MODEL = 32                   # embed_dim
D_PAD = 128                    # embed_dim lane-padded to a full vreg lane tile
E = 2 * D_MODEL                # d_inner (expand=2) = 64
E2 = 2 * E                     # both batches stacked on the lane axis = 128
N = 16                         # d_state
K = 4                          # d_conv
R = (D_MODEL + 15) // 16       # dt_rank = ceil(d_model / 16) = 2
BL = BATCH * L                 # flattened batch*seq rows = 16
EPS = 1e-5                     # LayerNorm eps

# row offsets inside the packed bf16 weight slab (width 128, all offsets 16-aligned)
W_IN0, W_IN1 = 0, D_PAD                       # (128,128) in_proj
W_DT0, W_DT1 = W_IN1, W_IN1 + E2              # (128,128) block-diag fused dt path
W_BC0, W_BC1 = W_DT1, W_DT1 + 4 * N           # ( 64,128) [B^T b0 | C^T b0 | B^T b1 | C^T b1]
W_OUT0, W_OUT1 = W_BC1, W_BC1 + E             # ( 64,128) out_proj
W_ROWS = W_OUT1                               # 384

# rows inside the f32 const block
C_TAP = 0          # rows 0..3 : conv taps (duplicated on both 64-lane halves)
C_CB = 4           # conv bias (dup)
C_DTB = 5          # dt_proj bias (dup)
C_D = 6            # D skip (dup)
C_A = 8            # rows 8..23 : A^T (dup), A = -exp(A_log)
C_G = 24           # LayerNorm gamma (lanes 0:32)
C_B = 25           # LayerNorm beta
C_M = 26           # LayerNorm lane mask (1.0 on the 32 real lanes)
C_ROWS = 32


def _silu_k(v):
    # divide pushed onto the EUP slot via the approximate reciprocal
    return v * pl.reciprocal(1.0 + jnp.exp(-v), approx=True)


def _softplus(v):
    # PyTorch-style linear threshold so large pre-activations cannot overflow to inf
    return jnp.where(v > 20.0, v, jnp.log(1.0 + jnp.exp(v)))


def mamba_block_kernel(x_ref, w_ref, c_ref, out_ref, da_scr, dbu_scr, cc_scr, y_scr):
    f32, bf16 = jnp.float32, jnp.bfloat16
    x = x_ref[...]                                              # (BL, 128) f32, lanes >= 32 zero

    # ---- in_proj over all batch*seq rows, then stack batch0|batch1 on the lane axis ----
    xz = jnp.dot(x.astype(bf16), w_ref[W_IN0:W_IN1, :], preferred_element_type=f32)   # (BL, 2E)
    xh_s = jnp.concatenate([xz[0:L, 0:E], xz[L:BL, 0:E]], axis=1)          # (L, E2)
    z_s = jnp.concatenate([xz[0:L, E:2 * E], xz[L:BL, E:2 * E]], axis=1)   # (L, E2)

    # ---- causal depthwise conv (K=4): sublane rolls (XLU) + first-rows mask; the two
    # batches sit on separate lane halves, so shifts never mix them. ----
    row = lax.broadcasted_iota(jnp.int32, (L, 1), 0)
    acc = xh_s * c_ref[C_TAP + K - 1:C_TAP + K, :]                          # shift 0 <-> last tap
    for s in range(1, K):
        shifted = jnp.where(row >= s, pltpu.roll(xh_s, shift=s, axis=0), 0.0)
        acc = acc + shifted * c_ref[C_TAP + K - 1 - s:C_TAP + K - s, :]
    u_s = _silu_k(acc + c_ref[C_CB:C_CB + 1, :])                            # (L, E2)
    u_bf = u_s.astype(bf16)

    # ---- x_proj: block-diag fused low-rank dt path (already batch-stacked) and one NT
    # matmul producing B^T / C^T for both batches (d_state on sublanes, time on lanes) ----
    dt_pre = (jnp.dot(u_bf, w_ref[W_DT0:W_DT1, :], preferred_element_type=f32)
              + c_ref[C_DTB:C_DTB + 1, :])
    delta_s = _softplus(dt_pre)                                             # (L, E2)
    bct = lax.dot_general(w_ref[W_BC0:W_BC1, :], u_bf, (((1,), (1,)), ((), ())),
                          preferred_element_type=f32)                       # (4N, L)

    # ---- precompute dA, dB*u and the lane-broadcast C into VMEM scratch: the EUP exp,
    # lane broadcasts and concats are all hoisted off the recurrence critical path. ----
    a_dup = c_ref[C_A:C_A + N, :]                                           # (N, E2) A^T dup
    du_s = delta_s * u_s
    for t in range(L):
        da_scr[t] = jnp.exp(delta_s[t:t + 1, :] * a_dup)                    # (N, E2)
        du_t = du_s[t:t + 1, :]
        dbu_scr[t] = jnp.concatenate(
            [bct[0:N, t:t + 1] * du_t[:, 0:E],
             bct[2 * N:3 * N, t:t + 1] * du_t[:, E:E2]], axis=1)            # (N, E2)
        cc_scr[t] = jnp.concatenate(
            [jnp.broadcast_to(bct[N:2 * N, t:t + 1], (N, E)),
             jnp.broadcast_to(bct[3 * N:4 * N, t:t + 1], (N, E))], axis=1)  # (N, E2)

    # ---- selective scan: 8 serial steps, state (N, E2) = full-lane vregs; each step is
    # mul+add plus an off-chain C reduce written to its own scratch row (no scatter). ----
    h = jnp.zeros((N, E2), f32)
    for t in range(L):
        h = da_scr[t] * h + dbu_scr[t]
        y_scr[t:t + 1, :] = jnp.sum(h * cc_scr[t], axis=0, keepdims=True)

    # ---- D skip + SiLU(z) gate (still stacked), then unstack to (BL, E) rows ----
    y_s = (y_scr[...] + u_s * c_ref[C_D:C_D + 1, :]) * _silu_k(z_s)         # (L, E2)
    y_row = jnp.concatenate([y_s[:, 0:E], y_s[:, E:E2]], axis=0)            # (BL, E)

    # ---- out_proj + residual + LayerNorm. NOTE: padded lanes (>= D_MODEL) of o and x are
    # exactly zero, so summing over all 128 lanes and dividing by D_MODEL is correct; the
    # lane-mask row keeps the two-pass variance exact as well. ----
    o = jnp.dot(y_row.astype(bf16), w_ref[W_OUT0:W_OUT1, :], preferred_element_type=f32)
    h_res = o + x                                                           # (BL, 128)
    mean = jnp.sum(h_res, axis=-1, keepdims=True) * (1.0 / D_MODEL)
    diff = h_res - mean * c_ref[C_M:C_M + 1, :]
    var = jnp.sum(diff * diff, axis=-1, keepdims=True) * (1.0 / D_MODEL)
    out_ref[...] = diff * lax.rsqrt(var + EPS) * c_ref[C_G:C_G + 1, :] + c_ref[C_B:C_B + 1, :]


def pack_params(raw):
    """Re-layout the module parameters into one bf16 weight slab + one f32 const block."""
    (w_in, conv_w, conv_b, w_x, w_dt, dt_b, a_log, d_skip, w_out, gamma, beta) = raw
    f32 = jnp.float32

    w_in_k = jnp.zeros((D_PAD, 2 * E), f32).at[:D_MODEL, :].set(w_in)       # (128, 128)

    w_dtf = jnp.dot(w_x[:, 2 * N:], w_dt)                                   # (E, E) fused dt path
    w_dtf_s = (jnp.zeros((E2, E2), f32)                                     # block-diag for the
               .at[:E, :E].set(w_dtf).at[E:, E:].set(w_dtf))                # two stacked batches

    w_bT = jnp.transpose(w_x[:, :N])                                        # (N, E)
    w_cT = jnp.transpose(w_x[:, N:2 * N])                                   # (N, E)
    w_bct = (jnp.zeros((4 * N, E2), f32)
             .at[0:N, :E].set(w_bT).at[N:2 * N, :E].set(w_cT)
             .at[2 * N:3 * N, E:].set(w_bT).at[3 * N:4 * N, E:].set(w_cT))  # (64, 128)

    w_out_k = jnp.zeros((E, D_PAD), f32).at[:, :D_MODEL].set(w_out)         # (64, 128)

    w_slab = jnp.concatenate([w_in_k, w_dtf_s, w_bct, w_out_k],
                             axis=0).astype(jnp.bfloat16)                   # (384, 128) bf16

    dup = lambda v: jnp.concatenate([v, v], axis=-1)                        # both 64-lane halves
    a_tr = jnp.transpose(-jnp.exp(a_log))                                   # (N, E)
    consts = jnp.zeros((C_ROWS, D_PAD), f32)
    consts = consts.at[C_TAP:C_TAP + K, :].set(dup(conv_w))
    consts = consts.at[C_CB, :].set(dup(conv_b))
    consts = consts.at[C_DTB, :].set(dup(dt_b))
    consts = consts.at[C_D, :].set(dup(d_skip))
    consts = consts.at[C_A:C_A + N, :].set(dup(a_tr))
    consts = consts.at[C_G, :D_MODEL].set(gamma)
    consts = consts.at[C_B, :D_MODEL].set(beta)
    consts = consts.at[C_M, :D_MODEL].set(1.0)
    return (w_slab, consts)


@jax.jit
def mamba_block_forward(x, packed):
    w_slab, consts = packed
    x_pad = jnp.pad(x.reshape(BL, D_MODEL), ((0, 0), (0, D_PAD - D_MODEL)))
    vmem = lambda: pl.BlockSpec(memory_space=pltpu.MemorySpace.VMEM)
    out = pl.pallas_call(
        mamba_block_kernel,
        out_shape=jax.ShapeDtypeStruct((BL, D_PAD), jnp.float32),
        in_specs=[vmem(), vmem(), vmem()],
        out_specs=vmem(),
        scratch_shapes=[
            pltpu.VMEM((L, N, E2), jnp.float32),   # dA  = exp(delta * A^T) per step
            pltpu.VMEM((L, N, E2), jnp.float32),   # dBu = (delta*u) * B per step
            pltpu.VMEM((L, N, E2), jnp.float32),   # C broadcast per step
            pltpu.VMEM((L, E2), jnp.float32),      # y rows (stacked)
        ],
    )(x_pad, w_slab, consts)
    return out[:, :D_MODEL].reshape(BATCH, L, D_MODEL)


def init_raw_params(key):
    ks = jax.random.split(key, 7)

    def unif(k, shape, fan_in):
        b = 1.0 / np.sqrt(fan_in)
        return jax.random.uniform(k, shape, jnp.float32, -b, b)

    w_in = unif(ks[0], (D_MODEL, 2 * E), D_MODEL)          # in_proj (bias=False)
    conv_w = unif(ks[1], (K, E), K)                        # depthwise conv taps
    conv_b = unif(ks[2], (E,), K)
    w_x = unif(ks[3], (E, 2 * N + R), E)                   # x_proj, columns [B | C | dt]
    dt_std = R ** -0.5
    w_dt = jax.random.uniform(ks[4], (R, E), jnp.float32, -dt_std, dt_std)   # dt_proj weight
    dt = jnp.exp(jax.random.uniform(ks[5], (E,), jnp.float32)
                 * (np.log(0.1) - np.log(1e-3)) + np.log(1e-3))
    dt = jnp.maximum(dt, 1e-4)
    dt_b = dt + jnp.log(-jnp.expm1(-dt))                   # inverse-softplus init (mamba)
    a_log = jnp.log(jnp.broadcast_to(jnp.arange(1, N + 1, dtype=jnp.float32), (E, N)))
    d_skip = jnp.ones((E,), jnp.float32)
    w_out = unif(ks[6], (E, D_MODEL), E)                   # out_proj (bias=False)
    gamma = jnp.ones((D_MODEL,), jnp.float32)              # LayerNorm weight
    beta = jnp.zeros((D_MODEL,), jnp.float32)              # LayerNorm bias
    return (w_in, conv_w, conv_b, w_x, w_dt, dt_b, a_log, d_skip, w_out, gamma, beta)


def reference(x, raw):
    """Pure-JAX reference for MambaBlock.forward: norm(mamba(x) + x); Dropout(p=0) = id.
    Matmul operands are cast to bf16 exactly as the kernel does (f32 accumulation)."""
    (w_in, conv_w, conv_b, w_x, w_dt, dt_b, a_log, d_skip, w_out, gamma, beta) = raw

    def mm(a, bmat):
        return jnp.dot(a.astype(jnp.bfloat16), bmat.astype(jnp.bfloat16),
                       preferred_element_type=jnp.float32)

    def silu(v):
        return v / (1.0 + jnp.exp(-v))

    def softplus(v):
        return jnp.where(v > 20.0, v, jnp.log(1.0 + jnp.exp(v)))

    xz = mm(x.reshape(BL, D_MODEL), w_in)                             # (BL, 2E)
    xh = xz[:, :E].reshape(BATCH, L, E)
    z = xz[:, E:].reshape(BATCH, L, E)

    xpad = jnp.pad(xh, ((0, 0), (K - 1, 0), (0, 0)))                  # causal depthwise conv
    conv = sum(xpad[:, k:k + L, :] * conv_w[k] for k in range(K)) + conv_b
    u = silu(conv)                                                    # (B, L, E)
    u2 = u.reshape(BL, E)

    xdbl = mm(u2, w_x[:, :2 * N])                                     # (BL, 2N) -> B, C
    b_ssm = xdbl[:, :N].reshape(BATCH, L, N)
    c_ssm = xdbl[:, N:].reshape(BATCH, L, N)
    w_dtf = jnp.dot(w_x[:, 2 * N:], w_dt)                             # fused low-rank dt path
    delta = softplus(mm(u2, w_dtf) + dt_b).reshape(BATCH, L, E)

    a_mat = -jnp.exp(a_log)                                           # (E, N)
    h = jnp.zeros((BATCH, E, N), jnp.float32)
    ys = []
    for t in range(L):
        d_t = delta[:, t, :]
        u_t = u[:, t, :]
        b_t = b_ssm[:, t, :]
        c_t = c_ssm[:, t, :]
        h = (jnp.exp(d_t[:, :, None] * a_mat[None]) * h
             + (d_t * u_t)[:, :, None] * b_t[:, None, :])
        ys.append(jnp.sum(h * c_t[:, None, :], axis=-1))              # (B, E)
    y = jnp.stack(ys, axis=1)                                         # (B, L, E)
    y = (y + u * d_skip) * silu(z)

    mamba_out = mm(y.reshape(BL, E), w_out).reshape(BATCH, L, D_MODEL)
    h_res = mamba_out + x
    mu = jnp.mean(h_res, axis=-1, keepdims=True)
    var = jnp.mean((h_res - mu) ** 2, axis=-1, keepdims=True)
    return (h_res - mu) * lax.rsqrt(var + EPS) * gamma + beta


if __name__ == "__main__":
    key = jax.random.PRNGKey(0)
    kx, kp = jax.random.split(key)
    x = jax.random.normal(kx, (BATCH, L, D_MODEL), jnp.float32)   # (batch, seq, embed_dim)
    raw = init_raw_params(kp)
    packed = pack_params(raw)

    out = jax.block_until_ready(mamba_block_forward(x, packed))
    ref = reference(x, raw)
    np.testing.assert_allclose(np.asarray(out), np.asarray(ref), rtol=1e-2, atol=1e-2)
    assert out.shape == (BATCH, L, D_MODEL)
    print("KERNEL_OK")
</pallas_src>

<mosaic_0001>
module attributes {stable_mosaic.version = 11 : i64} {
  func.func @mamba_block_kernel(%arg0: memref<16x128xf32, #tpu.memory_space<vmem>>, %arg1: memref<384x128xbf16, #tpu.memory_space<vmem>>, %arg2: memref<32x128xf32, #tpu.memory_space<vmem>>, %arg3: memref<16x128xf32, #tpu.memory_space<vmem>>, %arg4: memref<8x16x128xf32, #tpu.memory_space<vmem>>, %arg5: memref<8x16x128xf32, #tpu.memory_space<vmem>>, %arg6: memref<8x16x128xf32, #tpu.memory_space<vmem>>, %arg7: memref<8x128xf32, #tpu.memory_space<vmem>>) attributes {dimension_semantics = [], scalar_prefetch = 0 : i64, scratch_operands = 4 : i64, tpu.core_type = #tpu.core_type<tc>} {
    %c0 = arith.constant 0 : index
    %c0_0 = arith.constant 0 : index
    %0 = vector.load %arg0[%c0, %c0_0] : memref<16x128xf32, #tpu.memory_space<vmem>>, vector<16x128xf32>
    %1 = arith.truncf %0 : vector<16x128xf32> to vector<16x128xbf16>
    %c0_1 = arith.constant 0 : index
    %c0_2 = arith.constant 0 : index
    %2 = vector.load %arg1[%c0_1, %c0_2] : memref<384x128xbf16, #tpu.memory_space<vmem>>, vector<128x128xbf16>
    %cst = arith.constant dense<0.000000e+00> : vector<16x128xf32>
    %3 = tpu.matmul %1, %2, %cst {dimension_numbers = #tpu.dot_dimension_numbers<[1], [0], [0], [1], [0, 0, 1, 1], [], []>} : vector<16x128xbf16>, vector<128x128xbf16>, vector<16x128xf32> -> vector<16x128xf32>
    %4 = vector.extract_strided_slice %3 {offsets = [0, 0], sizes = [8, 64], strides = [1, 1]} : vector<16x128xf32> to vector<8x64xf32>
    %5 = vector.extract_strided_slice %3 {offsets = [8, 0], sizes = [8, 64], strides = [1, 1]} : vector<16x128xf32> to vector<8x64xf32>
    %6 = tpu.concatenate %4, %5 in 1 : vector<8x64xf32>, vector<8x64xf32> -> vector<8x128xf32>
    %7 = vector.extract_strided_slice %3 {offsets = [0, 64], sizes = [8, 64], strides = [1, 1]} : vector<16x128xf32> to vector<8x64xf32>
    %8 = vector.extract_strided_slice %3 {offsets = [8, 64], sizes = [8, 64], strides = [1, 1]} : vector<16x128xf32> to vector<8x64xf32>
    %9 = tpu.concatenate %7, %8 in 1 : vector<8x64xf32>, vector<8x64xf32> -> vector<8x128xf32>
    %10 = tpu.iota {dimensions = array<i32: 0>} : vector<8x1xi32>
    %c3 = arith.constant 3 : index
    %c0_3 = arith.constant 0 : index
    %11 = vector.load %arg2[%c3, %c0_3] : memref<32x128xf32, #tpu.memory_space<vmem>>, vector<1x128xf32>
    %12 = vector.broadcast %11 : vector<1x128xf32> to vector<8x128xf32>
    %13 = arith.mulf %6, %12 : vector<8x128xf32>
    %c1_i32 = arith.constant 1 : i32
    %14 = vector.broadcast %c1_i32 : i32 to vector<8x1xi32>
    %15 = arith.cmpi sge, %10, %14 : vector<8x1xi32>
    %c1_i32_4 = arith.constant 1 : i32
    %16 = tpu.dynamic_rotate %6 by %c1_i32_4 dim 0 : vector<8x128xf32>, i32 -> vector<8x128xf32>
    %cst_5 = arith.constant 0.000000e+00 : f32
    %17 = vector.shape_cast %15 : vector<8x1xi1> to vector<8x1xi1>
    %18 = vector.broadcast %17 : vector<8x1xi1> to vector<8x128xi1>
    %19 = vector.broadcast %cst_5 : f32 to vector<8x128xf32>
    %20 = arith.select %18, %16, %19 : vector<8x128xi1>, vector<8x128xf32>
    %c2 = arith.constant 2 : index
    %c0_6 = arith.constant 0 : index
    %21 = vector.load %arg2[%c2, %c0_6] : memref<32x128xf32, #tpu.memory_space<vmem>>, vector<1x128xf32>
    %22 = vector.broadcast %21 : vector<1x128xf32> to vector<8x128xf32>
    %23 = arith.mulf %20, %22 : vector<8x128xf32>
    %24 = arith.addf %13, %23 : vector<8x128xf32>
    %c2_i32 = arith.constant 2 : i32
    %25 = vector.broadcast %c2_i32 : i32 to vector<8x1xi32>
    %26 = arith.cmpi sge, %10, %25 : vector<8x1xi32>
    %c2_i32_7 = arith.constant 2 : i32
    %27 = tpu.dynamic_rotate %6 by %c2_i32_7 dim 0 : vector<8x128xf32>, i32 -> vector<8x128xf32>
    %cst_8 = arith.constant 0.000000e+00 : f32
    %28 = vector.shape_cast %26 : vector<8x1xi1> to vector<8x1xi1>
    %29 = vector.broadcast %28 : vector<8x1xi1> to vector<8x128xi1>
    %30 = vector.broadcast %cst_8 : f32 to vector<8x128xf32>
    %31 = arith.select %29, %27, %30 : vector<8x128xi1>, vector<8x128xf32>
    %c1 = arith.constant 1 : index
    %c0_9 = arith.constant 0 : index
    %32 = vector.load %arg2[%c1, %c0_9] : memref<32x128xf32, #tpu.memory_space<vmem>>, vector<1x128xf32>
    %33 = vector.broadcast %32 : vector<1x128xf32> to vector<8x128xf32>
    %34 = arith.mulf %31, %33 : vector<8x128xf32>
    %35 = arith.addf %24, %34 : vector<8x128xf32>
    %c3_i32 = arith.constant 3 : i32
    %36 = vector.broadcast %c3_i32 : i32 to vector<8x1xi32>
    %37 = arith.cmpi sge, %10, %36 : vector<8x1xi32>
    %c3_i32_10 = arith.constant 3 : i32
    %38 = tpu.dynamic_rotate %6 by %c3_i32_10 dim 0 : vector<8x128xf32>, i32 -> vector<8x128xf32>
    %cst_11 = arith.constant 0.000000e+00 : f32
    %39 = vector.shape_cast %37 : vector<8x1xi1> to vector<8x1xi1>
    %40 = vector.broadcast %39 : vector<8x1xi1> to vector<8x128xi1>
    %41 = vector.broadcast %cst_11 : f32 to vector<8x128xf32>
    %42 = arith.select %40, %38, %41 : vector<8x128xi1>, vector<8x128xf32>
    %c0_12 = arith.constant 0 : index
    %c0_13 = arith.constant 0 : index
    %43 = vector.load %arg2[%c0_12, %c0_13] : memref<32x128xf32, #tpu.memory_space<vmem>>, vector<1x128xf32>
    %44 = vector.broadcast %43 : vector<1x128xf32> to vector<8x128xf32>
    %45 = arith.mulf %42, %44 : vector<8x128xf32>
    %46 = arith.addf %35, %45 : vector<8x128xf32>
    %c4 = arith.constant 4 : index
    %c0_14 = arith.constant 0 : index
    %47 = vector.load %arg2[%c4, %c0_14] : memref<32x128xf32, #tpu.memory_space<vmem>>, vector<1x128xf32>
    %48 = vector.broadcast %47 : vector<1x128xf32> to vector<8x128xf32>
    %49 = arith.addf %46, %48 : vector<8x128xf32>
    %cst_15 = arith.constant 0.000000e+00 : f32
    %50 = vector.broadcast %cst_15 : f32 to vector<8x128xf32>
    %51 = arith.subf %50, %49 : vector<8x128xf32>
    %52 = math.exp %51 : vector<8x128xf32>
    %cst_16 = arith.constant 1.000000e+00 : f32
    %53 = vector.broadcast %cst_16 : f32 to vector<8x128xf32>
    %54 = arith.addf %53, %52 : vector<8x128xf32>
    %55 = tpu.reciprocal %54 {approx = true} : vector<8x128xf32> -> vector<8x128xf32>
    %56 = arith.mulf %49, %55 : vector<8x128xf32>
    %57 = arith.truncf %56 : vector<8x128xf32> to vector<8x128xbf16>
    %c128 = arith.constant 128 : index
    %c0_17 = arith.constant 0 : index
    %58 = vector.load %arg1[%c128, %c0_17] : memref<384x128xbf16, #tpu.memory_space<vmem>>, vector<128x128xbf16>
    %cst_18 = arith.constant dense<0.000000e+00> : vector<8x128xf32>
    %59 = tpu.matmul %57, %58, %cst_18 {dimension_numbers = #tpu.dot_dimension_numbers<[1], [0], [0], [1], [0, 0, 1, 1], [], []>} : vector<8x128xbf16>, vector<128x128xbf16>, vector<8x128xf32> -> vector<8x128xf32>
    %c5 = arith.constant 5 : index
    %c0_19 = arith.constant 0 : index
    %60 = vector.load %arg2[%c5, %c0_19] : memref<32x128xf32, #tpu.memory_space<vmem>>, vector<1x128xf32>
    %61 = vector.broadcast %60 : vector<1x128xf32> to vector<8x128xf32>
    %62 = arith.addf %59, %61 : vector<8x128xf32>
    %cst_20 = arith.constant 2.000000e+01 : f32
    %63 = vector.broadcast %cst_20 : f32 to vector<8x128xf32>
    %64 = arith.cmpf ogt, %62, %63 : vector<8x128xf32>
    %65 = math.exp %62 : vector<8x128xf32>
    %cst_21 = arith.constant 1.000000e+00 : f32
    %66 = vector.broadcast %cst_21 : f32 to vector<8x128xf32>
    %67 = arith.addf %66, %65 : vector<8x128xf32>
    %68 = math.log %67 : vector<8x128xf32>
    %69 = arith.select %64, %62, %68 : vector<8x128xi1>, vector<8x128xf32>
    %c256 = arith.constant 256 : index
    %c0_22 = arith.constant 0 : index
    %70 = vector.load %arg1[%c256, %c0_22] : memref<384x128xbf16, #tpu.memory_space<vmem>>, vector<64x128xbf16>
    %cst_23 = arith.constant dense<0.000000e+00> : vector<64x8xf32>
    %71 = tpu.matmul %70, %57, %cst_23 {dimension_numbers = #tpu.dot_dimension_numbers<[1], [1], [0], [0], [0, 0, 1, 0], [], []>} : vector<64x128xbf16>, vector<8x128xbf16>, vector<64x8xf32> -> vector<64x8xf32>
    %c8 = arith.constant 8 : index
    %c0_24 = arith.constant 0 : index
    %72 = vector.load %arg2[%c8, %c0_24] : memref<32x128xf32, #tpu.memory_space<vmem>>, vector<16x128xf32>
    %73 = arith.mulf %69, %56 : vector<8x128xf32>
    %74 = vector.extract_strided_slice %69 {offsets = [0, 0], sizes = [1, 128], strides = [1, 1]} : vector<8x128xf32> to vector<1x128xf32>
    %75 = vector.broadcast %74 : vector<1x128xf32> to vector<16x128xf32>
    %76 = arith.mulf %75, %72 : vector<16x128xf32>
    %77 = math.exp %76 : vector<16x128xf32>
    %c0_25 = arith.constant 0 : index
    %c0_26 = arith.constant 0 : index
    %c0_27 = arith.constant 0 : index
    %78 = vector.load %arg4[%c0_25, %c0_26, %c0_27] : memref<8x16x128xf32, #tpu.memory_space<vmem>>, vector<1x16x128xf32>
    %79 = vector.shape_cast %78 : vector<1x16x128xf32> to vector<16x128xf32>
    %80 = vector.shape_cast %77 : vector<16x128xf32> to vector<1x16x128xf32>
    tpu.vector_store %arg4[%c0_25, %c0_26, %c0_27], %80 {strides = array<i32>} : memref<8x16x128xf32, #tpu.memory_space<vmem>>, vector<1x16x128xf32>,
    %81 = vector.extract_strided_slice %73 {offsets = [0, 0], sizes = [1, 128], strides = [1, 1]} : vector<8x128xf32> to vector<1x128xf32>
    %82 = vector.extract_strided_slice %71 {offsets = [0, 0], sizes = [16, 1], strides = [1, 1]} : vector<64x8xf32> to vector<16x1xf32>
    %83 = vector.extract_strided_slice %81 {offsets = [0, 0], sizes = [1, 64], strides = [1, 1]} : vector<1x128xf32> to vector<1x64xf32>
    %84 = vector.broadcast %82 : vector<16x1xf32> to vector<16x64xf32>
    %85 = vector.broadcast %83 : vector<1x64xf32> to vector<16x64xf32>
    %86 = arith.mulf %84, %85 : vector<16x64xf32>
    %87 = vector.extract_strided_slice %71 {offsets = [32, 0], sizes = [16, 1], strides = [1, 1]} : vector<64x8xf32> to vector<16x1xf32>
    %88 = vector.extract_strided_slice %81 {offsets = [0, 64], sizes = [1, 64], strides = [1, 1]} : vector<1x128xf32> to vector<1x64xf32>
    %89 = vector.broadcast %87 : vector<16x1xf32> to vector<16x64xf32>
    %90 = vector.broadcast %88 : vector<1x64xf32> to vector<16x64xf32>
    %91 = arith.mulf %89, %90 : vector<16x64xf32>
    %92 = tpu.concatenate %86, %91 in 1 : vector<16x64xf32>, vector<16x64xf32> -> vector<16x128xf32>
    %c0_28 = arith.constant 0 : index
    %c0_29 = arith.constant 0 : index
    %c0_30 = arith.constant 0 : index
    %93 = vector.load %arg5[%c0_28, %c0_29, %c0_30] : memref<8x16x128xf32, #tpu.memory_space<vmem>>, vector<1x16x128xf32>
    %94 = vector.shape_cast %93 : vector<1x16x128xf32> to vector<16x128xf32>
    %95 = vector.shape_cast %92 : vector<16x128xf32> to vector<1x16x128xf32>
    tpu.vector_store %arg5[%c0_28, %c0_29, %c0_30], %95 {strides = array<i32>} : memref<8x16x128xf32, #tpu.memory_space<vmem>>, vector<1x16x128xf32>,
    %96 = vector.extract_strided_slice %71 {offsets = [16, 0], sizes = [16, 1], strides = [1, 1]} : vector<64x8xf32> to vector<16x1xf32>
    %97 = vector.shape_cast %96 : vector<16x1xf32> to vector<16x1xf32>
    %98 = vector.broadcast %97 : vector<16x1xf32> to vector<16x64xf32>
    %99 = vector.extract_strided_slice %71 {offsets = [48, 0], sizes = [16, 1], strides = [1, 1]} : vector<64x8xf32> to vector<16x1xf32>
    %100 = vector.shape_cast %99 : vector<16x1xf32> to vector<16x1xf32>
    %101 = vector.broadcast %100 : vector<16x1xf32> to vector<16x64xf32>
    %102 = tpu.concatenate %98, %101 in 1 : vector<16x64xf32>, vector<16x64xf32> -> vector<16x128xf32>
    %c0_31 = arith.constant 0 : index
    %c0_32 = arith.constant 0 : index
    %c0_33 = arith.constant 0 : index
    %103 = vector.load %arg6[%c0_31, %c0_32, %c0_33] : memref<8x16x128xf32, #tpu.memory_space<vmem>>, vector<1x16x128xf32>
    %104 = vector.shape_cast %103 : vector<1x16x128xf32> to vector<16x128xf32>
    %105 = vector.shape_cast %102 : vector<16x128xf32> to vector<1x16x128xf32>
    tpu.vector_store %arg6[%c0_31, %c0_32, %c0_33], %105 {strides = array<i32>} : memref<8x16x128xf32, #tpu.memory_space<vmem>>, vector<1x16x128xf32>,
    %106 = vector.extract_strided_slice %69 {offsets = [1, 0], sizes = [1, 128], strides = [1, 1]} : vector<8x128xf32> to vector<1x128xf32>
    %107 = vector.broadcast %106 : vector<1x128xf32> to vector<16x128xf32>
    %108 = arith.mulf %107, %72 : vector<16x128xf32>
    %109 = math.exp %108 : vector<16x128xf32>
    %c1_34 = arith.constant 1 : index
    %c0_35 = arith.constant 0 : index
    %c0_36 = arith.constant 0 : index
    %110 = vector.load %arg4[%c1_34, %c0_35, %c0_36] : memref<8x16x128xf32, #tpu.memory_space<vmem>>, vector<1x16x128xf32>
    %111 = vector.shape_cast %110 : vector<1x16x128xf32> to vector<16x128xf32>
    %112 = vector.shape_cast %109 : vector<16x128xf32> to vector<1x16x128xf32>
    tpu.vector_store %arg4[%c1_34, %c0_35, %c0_36], %112 {strides = array<i32>} : memref<8x16x128xf32, #tpu.memory_space<vmem>>, vector<1x16x128xf32>,
    %113 = vector.extract_strided_slice %73 {offsets = [1, 0], sizes = [1, 128], strides = [1, 1]} : vector<8x128xf32> to vector<1x128xf32>
    %114 = vector.extract_strided_slice %71 {offsets = [0, 1], sizes = [16, 1], strides = [1, 1]} : vector<64x8xf32> to vector<16x1xf32>
    %115 = vector.extract_strided_slice %113 {offsets = [0, 0], sizes = [1, 64], strides = [1, 1]} : vector<1x128xf32> to vector<1x64xf32>
    %116 = vector.broadcast %114 : vector<16x1xf32> to vector<16x64xf32>
    %117 = vector.broadcast %115 : vector<1x64xf32> to vector<16x64xf32>
    %118 = arith.mulf %116, %117 : vector<16x64xf32>
    %119 = vector.extract_strided_slice %71 {offsets = [32, 1], sizes = [16, 1], strides = [1, 1]} : vector<64x8xf32> to vector<16x1xf32>
    %120 = vector.extract_strided_slice %113 {offsets = [0, 64], sizes = [1, 64], strides = [1, 1]} : vector<1x128xf32> to vector<1x64xf32>
    %121 = vector.broadcast %119 : vector<16x1xf32> to vector<16x64xf32>
    %122 = vector.broadcast %120 : vector<1x64xf32> to vector<16x64xf32>
    %123 = arith.mulf %121, %122 : vector<16x64xf32>
    %124 = tpu.concatenate %118, %123 in 1 : vector<16x64xf32>, vector<16x64xf32> -> vector<16x128xf32>
    %c1_37 = arith.constant 1 : index
    %c0_38 = arith.constant 0 : index
    %c0_39 = arith.constant 0 : index
    %125 = vector.load %arg5[%c1_37, %c0_38, %c0_39] : memref<8x16x128xf32, #tpu.memory_space<vmem>>, vector<1x16x128xf32>
    %126 = vector.shape_cast %125 : vector<1x16x128xf32> to vector<16x128xf32>
    %127 = vector.shape_cast %124 : vector<16x128xf32> to vector<1x16x128xf32>
    tpu.vector_store %arg5[%c1_37, %c0_38, %c0_39], %127 {strides = array<i32>} : memref<8x16x128xf32, #tpu.memory_space<vmem>>, vector<1x16x128xf32>,
    %128 = vector.extract_strided_slice %71 {offsets = [16, 1], sizes = [16, 1], strides = [1, 1]} : vector<64x8xf32> to vector<16x1xf32>
    %129 = vector.shape_cast %128 : vector<16x1xf32> to vector<16x1xf32>
    %130 = vector.broadcast %129 : vector<16x1xf32> to vector<16x64xf32>
    %131 = vector.extract_strided_slice %71 {offsets = [48, 1], sizes = [16, 1], strides = [1, 1]} : vector<64x8xf32> to vector<16x1xf32>
    %132 = vector.shape_cast %131 : vector<16x1xf32> to vector<16x1xf32>
    %133 = vector.broadcast %132 : vector<16x1xf32> to vector<16x64xf32>
    %134 = tpu.concatenate %130, %133 in 1 : vector<16x64xf32>, vector<16x64xf32> -> vector<16x128xf32>
    %c1_40 = arith.constant 1 : index
    %c0_41 = arith.constant 0 : index
    %c0_42 = arith.constant 0 : index
    %135 = vector.load %arg6[%c1_40, %c0_41, %c0_42] : memref<8x16x128xf32, #tpu.memory_space<vmem>>, vector<1x16x128xf32>
    %136 = vector.shape_cast %135 : vector<1x16x128xf32> to vector<16x128xf32>
    %137 = vector.shape_cast %134 : vector<16x128xf32> to vector<1x16x128xf32>
    tpu.vector_store %arg6[%c1_40, %c0_41, %c0_42], %137 {strides = array<i32>} : memref<8x16x128xf32, #tpu.memory_space<vmem>>, vector<1x16x128xf32>,
    %138 = vector.extract_strided_slice %69 {offsets = [2, 0], sizes = [1, 128], strides = [1, 1]} : vector<8x128xf32> to vector<1x128xf32>
    %139 = vector.broadcast %138 : vector<1x128xf32> to vector<16x128xf32>
    %140 = arith.mulf %139, %72 : vector<16x128xf32>
    %141 = math.exp %140 : vector<16x128xf32>
    %c2_43 = arith.constant 2 : index
    %c0_44 = arith.constant 0 : index
    %c0_45 = arith.constant 0 : index
    %142 = vector.load %arg4[%c2_43, %c0_44, %c0_45] : memref<8x16x128xf32, #tpu.memory_space<vmem>>, vector<1x16x128xf32>
    %143 = vector.shape_cast %142 : vector<1x16x128xf32> to vector<16x128xf32>
    %144 = vector.shape_cast %141 : vector<16x128xf32> to vector<1x16x128xf32>
    tpu.vector_store %arg4[%c2_43, %c0_44, %c0_45], %144 {strides = array<i32>} : memref<8x16x128xf32, #tpu.memory_space<vmem>>, vector<1x16x128xf32>,
    %145 = vector.extract_strided_slice %73 {offsets = [2, 0], sizes = [1, 128], strides = [1, 1]} : vector<8x128xf32> to vector<1x128xf32>
    %146 = vector.extract_strided_slice %71 {offsets = [0, 2], sizes = [16, 1], strides = [1, 1]} : vector<64x8xf32> to vector<16x1xf32>
    %147 = vector.extract_strided_slice %145 {offsets = [0, 0], sizes = [1, 64], strides = [1, 1]} : vector<1x128xf32> to vector<1x64xf32>
    %148 = vector.broadcast %146 : vector<16x1xf32> to vector<16x64xf32>
    %149 = vector.broadcast %147 : vector<1x64xf32> to vector<16x64xf32>
    %150 = arith.mulf %148, %149 : vector<16x64xf32>
    %151 = vector.extract_strided_slice %71 {offsets = [32, 2], sizes = [16, 1], strides = [1, 1]} : vector<64x8xf32> to vector<16x1xf32>
    %152 = vector.extract_strided_slice %145 {offsets = [0, 64], sizes = [1, 64], strides = [1, 1]} : vector<1x128xf32> to vector<1x64xf32>
    %153 = vector.broadcast %151 : vector<16x1xf32> to vector<16x64xf32>
    %154 = vector.broadcast %152 : vector<1x64xf32> to vector<16x64xf32>
    %155 = arith.mulf %153, %154 : vector<16x64xf32>
    %156 = tpu.concatenate %150, %155 in 1 : vector<16x64xf32>, vector<16x64xf32> -> vector<16x128xf32>
    %c2_46 = arith.constant 2 : index
    %c0_47 = arith.constant 0 : index
    %c0_48 = arith.constant 0 : index
    %157 = vector.load %arg5[%c2_46, %c0_47, %c0_48] : memref<8x16x128xf32, #tpu.memory_space<vmem>>, vector<1x16x128xf32>
    %158 = vector.shape_cast %157 : vector<1x16x128xf32> to vector<16x128xf32>
    %159 = vector.shape_cast %156 : vector<16x128xf32> to vector<1x16x128xf32>
    tpu.vector_store %arg5[%c2_46, %c0_47, %c0_48], %159 {strides = array<i32>} : memref<8x16x128xf32, #tpu.memory_space<vmem>>, vector<1x16x128xf32>,
    %160 = vector.extract_strided_slice %71 {offsets = [16, 2], sizes = [16, 1], strides = [1, 1]} : vector<64x8xf32> to vector<16x1xf32>
    %161 = vector.shape_cast %160 : vector<16x1xf32> to vector<16x1xf32>
    %162 = vector.broadcast %161 : vector<16x1xf32> to vector<16x64xf32>
    %163 = vector.extract_strided_slice %71 {offsets = [48, 2], sizes = [16, 1], strides = [1, 1]} : vector<64x8xf32> to vector<16x1xf32>
    %164 = vector.shape_cast %163 : vector<16x1xf32> to vector<16x1xf32>
    %165 = vector.broadcast %164 : vector<16x1xf32> to vector<16x64xf32>
    %166 = tpu.concatenate %162, %165 in 1 : vector<16x64xf32>, vector<16x64xf32> -> vector<16x128xf32>
    %c2_49 = arith.constant 2 : index
    %c0_50 = arith.constant 0 : index
    %c0_51 = arith.constant 0 : index
    %167 = vector.load %arg6[%c2_49, %c0_50, %c0_51] : memref<8x16x128xf32, #tpu.memory_space<vmem>>, vector<1x16x128xf32>
    %168 = vector.shape_cast %167 : vector<1x16x128xf32> to vector<16x128xf32>
    %169 = vector.shape_cast %166 : vector<16x128xf32> to vector<1x16x128xf32>
    tpu.vector_store %arg6[%c2_49, %c0_50, %c0_51], %169 {strides = array<i32>} : memref<8x16x128xf32, #tpu.memory_space<vmem>>, vector<1x16x128xf32>,
    %170 = vector.extract_strided_slice %69 {offsets = [3, 0], sizes = [1, 128], strides = [1, 1]} : vector<8x128xf32> to vector<1x128xf32>
    %171 = vector.broadcast %170 : vector<1x128xf32> to vector<16x128xf32>
    %172 = arith.mulf %171, %72 : vector<16x128xf32>
    %173 = math.exp %172 : vector<16x128xf32>
    %c3_52 = arith.constant 3 : index
    %c0_53 = arith.constant 0 : index
    %c0_54 = arith.constant 0 : index
    %174 = vector.load %arg4[%c3_52, %c0_53, %c0_54] : memref<8x16x128xf32, #tpu.memory_space<vmem>>, vector<1x16x128xf32>
    %175 = vector.shape_cast %174 : vector<1x16x128xf32> to vector<16x128xf32>
    %176 = vector.shape_cast %173 : vector<16x128xf32> to vector<1x16x128xf32>
    tpu.vector_store %arg4[%c3_52, %c0_53, %c0_54], %176 {strides = array<i32>} : memref<8x16x128xf32, #tpu.memory_space<vmem>>, vector<1x16x128xf32>,
    %177 = vector.extract_strided_slice %73 {offsets = [3, 0], sizes = [1, 128], strides = [1, 1]} : vector<8x128xf32> to vector<1x128xf32>
    %178 = vector.extract_strided_slice %71 {offsets = [0, 3], sizes = [16, 1], strides = [1, 1]} : vector<64x8xf32> to vector<16x1xf32>
    %179 = vector.extract_strided_slice %177 {offsets = [0, 0], sizes = [1, 64], strides = [1, 1]} : vector<1x128xf32> to vector<1x64xf32>
    %180 = vector.broadcast %178 : vector<16x1xf32> to vector<16x64xf32>
    %181 = vector.broadcast %179 : vector<1x64xf32> to vector<16x64xf32>
    %182 = arith.mulf %180, %181 : vector<16x64xf32>
    %183 = vector.extract_strided_slice %71 {offsets = [32, 3], sizes = [16, 1], strides = [1, 1]} : vector<64x8xf32> to vector<16x1xf32>
    %184 = vector.extract_strided_slice %177 {offsets = [0, 64], sizes = [1, 64], strides = [1, 1]} : vector<1x128xf32> to vector<1x64xf32>
    %185 = vector.broadcast %183 : vector<16x1xf32> to vector<16x64xf32>
    %186 = vector.broadcast %184 : vector<1x64xf32> to vector<16x64xf32>
    %187 = arith.mulf %185, %186 : vector<16x64xf32>
    %188 = tpu.concatenate %182, %187 in 1 : vector<16x64xf32>, vector<16x64xf32> -> vector<16x128xf32>
    %c3_55 = arith.constant 3 : index
    %c0_56 = arith.constant 0 : index
    %c0_57 = arith.constant 0 : index
    %189 = vector.load %arg5[%c3_55, %c0_56, %c0_57] : memref<8x16x128xf32, #tpu.memory_space<vmem>>, vector<1x16x128xf32>
    %190 = vector.shape_cast %189 : vector<1x16x128xf32> to vector<16x128xf32>
    %191 = vector.shape_cast %188 : vector<16x128xf32> to vector<1x16x128xf32>
    tpu.vector_store %arg5[%c3_55, %c0_56, %c0_57], %191 {strides = array<i32>} : memref<8x16x128xf32, #tpu.memory_space<vmem>>, vector<1x16x128xf32>,
    %192 = vector.extract_strided_slice %71 {offsets = [16, 3], sizes = [16, 1], strides = [1, 1]} : vector<64x8xf32> to vector<16x1xf32>
    %193 = vector.shape_cast %192 : vector<16x1xf32> to vector<16x1xf32>
    %194 = vector.broadcast %193 : vector<16x1xf32> to vector<16x64xf32>
    %195 = vector.extract_strided_slice %71 {offsets = [48, 3], sizes = [16, 1], strides = [1, 1]} : vector<64x8xf32> to vector<16x1xf32>
    %196 = vector.shape_cast %195 : vector<16x1xf32> to vector<16x1xf32>
    %197 = vector.broadcast %196 : vector<16x1xf32> to vector<16x64xf32>
    %198 = tpu.concatenate %194, %197 in 1 : vector<16x64xf32>, vector<16x64xf32> -> vector<16x128xf32>
    %c3_58 = arith.constant 3 : index
    %c0_59 = arith.constant 0 : index
    %c0_60 = arith.constant 0 : index
    %199 = vector.load %arg6[%c3_58, %c0_59, %c0_60] : memref<8x16x128xf32, #tpu.memory_space<vmem>>, vector<1x16x128xf32>
    %200 = vector.shape_cast %199 : vector<1x16x128xf32> to vector<16x128xf32>
    %201 = vector.shape_cast %198 : vector<16x128xf32> to vector<1x16x128xf32>
    tpu.vector_store %arg6[%c3_58, %c0_59, %c0_60], %201 {strides = array<i32>} : memref<8x16x128xf32, #tpu.memory_space<vmem>>, vector<1x16x128xf32>,
    %202 = vector.extract_strided_slice %69 {offsets = [4, 0], sizes = [1, 128], strides = [1, 1]} : vector<8x128xf32> to vector<1x128xf32>
    %203 = vector.broadcast %202 : vector<1x128xf32> to vector<16x128xf32>
    %204 = arith.mulf %203, %72 : vector<16x128xf32>
    %205 = math.exp %204 : vector<16x128xf32>
    %c4_61 = arith.constant 4 : index
    %c0_62 = arith.constant 0 : index
    %c0_63 = arith.constant 0 : index
    %206 = vector.load %arg4[%c4_61, %c0_62, %c0_63] : memref<8x16x128xf32, #tpu.memory_space<vmem>>, vector<1x16x128xf32>
    %207 = vector.shape_cast %206 : vector<1x16x128xf32> to vector<16x128xf32>
    %208 = vector.shape_cast %205 : vector<16x128xf32> to vector<1x16x128xf32>
    tpu.vector_store %arg4[%c4_61, %c0_62, %c0_63], %208 {strides = array<i32>} : memref<8x16x128xf32, #tpu.memory_space<vmem>>, vector<1x16x128xf32>,
    %209 = vector.extract_strided_slice %73 {offsets = [4, 0], sizes = [1, 128], strides = [1, 1]} : vector<8x128xf32> to vector<1x128xf32>
    %210 = vector.extract_strided_slice %71 {offsets = [0, 4], sizes = [16, 1], strides = [1, 1]} : vector<64x8xf32> to vector<16x1xf32>
    %211 = vector.extract_strided_slice %209 {offsets = [0, 0], sizes = [1, 64], strides = [1, 1]} : vector<1x128xf32> to vector<1x64xf32>
    %212 = vector.broadcast %210 : vector<16x1xf32> to vector<16x64xf32>
    %213 = vector.broadcast %211 : vector<1x64xf32> to vector<16x64xf32>
    %214 = arith.mulf %212, %213 : vector<16x64xf32>
    %215 = vector.extract_strided_slice %71 {offsets = [32, 4], sizes = [16, 1], strides = [1, 1]} : vector<64x8xf32> to vector<16x1xf32>
    %216 = vector.extract_strided_slice %209 {offsets = [0, 64], sizes = [1, 64], strides = [1, 1]} : vector<1x128xf32> to vector<1x64xf32>
    %217 = vector.broadcast %215 : vector<16x1xf32> to vector<16x64xf32>
    %218 = vector.broadcast %216 : vector<1x64xf32> to vector<16x64xf32>
    %219 = arith.mulf %217, %218 : vector<16x64xf32>
    %220 = tpu.concatenate %214, %219 in 1 : vector<16x64xf32>, vector<16x64xf32> -> vector<16x128xf32>
    %c4_64 = arith.constant 4 : index
    %c0_65 = arith.constant 0 : index
    %c0_66 = arith.constant 0 : index
    %221 = vector.load %arg5[%c4_64, %c0_65, %c0_66] : memref<8x16x128xf32, #tpu.memory_space<vmem>>, vector<1x16x128xf32>
    %222 = vector.shape_cast %221 : vector<1x16x128xf32> to vector<16x128xf32>
    %223 = vector.shape_cast %220 : vector<16x128xf32> to vector<1x16x128xf32>
    tpu.vector_store %arg5[%c4_64, %c0_65, %c0_66], %223 {strides = array<i32>} : memref<8x16x128xf32, #tpu.memory_space<vmem>>, vector<1x16x128xf32>,
    %224 = vector.extract_strided_slice %71 {offsets = [16, 4], sizes = [16, 1], strides = [1, 1]} : vector<64x8xf32> to vector<16x1xf32>
    %225 = vector.shape_cast %224 : vector<16x1xf32> to vector<16x1xf32>
    %226 = vector.broadcast %225 : vector<16x1xf32> to vector<16x64xf32>
    %227 = vector.extract_strided_slice %71 {offsets = [48, 4], sizes = [16, 1], strides = [1, 1]} : vector<64x8xf32> to vector<16x1xf32>
    %228 = vector.shape_cast %227 : vector<16x1xf32> to vector<16x1xf32>
    %229 = vector.broadcast %228 : vector<16x1xf32> to vector<16x64xf32>
    %230 = tpu.concatenate %226, %229 in 1 : vector<16x64xf32>, vector<16x64xf32> -> vector<16x128xf32>
    %c4_67 = arith.constant 4 : index
    %c0_68 = arith.constant 0 : index
    %c0_69 = arith.constant 0 : index
    %231 = vector.load %arg6[%c4_67, %c0_68, %c0_69] : memref<8x16x128xf32, #tpu.memory_space<vmem>>, vector<1x16x128xf32>
    %232 = vector.shape_cast %231 : vector<1x16x128xf32> to vector<16x128xf32>
    %233 = vector.shape_cast %230 : vector<16x128xf32> to vector<1x16x128xf32>
    tpu.vector_store %arg6[%c4_67, %c0_68, %c0_69], %233 {strides = array<i32>} : memref<8x16x128xf32, #tpu.memory_space<vmem>>, vector<1x16x128xf32>,
    %234 = vector.extract_strided_slice %69 {offsets = [5, 0], sizes = [1, 128], strides = [1, 1]} : vector<8x128xf32> to vector<1x128xf32>
    %235 = vector.broadcast %234 : vector<1x128xf32> to vector<16x128xf32>
    %236 = arith.mulf %235, %72 : vector<16x128xf32>
    %237 = math.exp %236 : vector<16x128xf32>
    %c5_70 = arith.constant 5 : index
    %c0_71 = arith.constant 0 : index
    %c0_72 = arith.constant 0 : index
    %238 = vector.load %arg4[%c5_70, %c0_71, %c0_72] : memref<8x16x128xf32, #tpu.memory_space<vmem>>, vector<1x16x128xf32>
    %239 = vector.shape_cast %238 : vector<1x16x128xf32> to vector<16x128xf32>
    %240 = vector.shape_cast %237 : vector<16x128xf32> to vector<1x16x128xf32>
    tpu.vector_store %arg4[%c5_70, %c0_71, %c0_72], %240 {strides = array<i32>} : memref<8x16x128xf32, #tpu.memory_space<vmem>>, vector<1x16x128xf32>,
    %241 = vector.extract_strided_slice %73 {offsets = [5, 0], sizes = [1, 128], strides = [1, 1]} : vector<8x128xf32> to vector<1x128xf32>
    %242 = vector.extract_strided_slice %71 {offsets = [0, 5], sizes = [16, 1], strides = [1, 1]} : vector<64x8xf32> to vector<16x1xf32>
    %243 = vector.extract_strided_slice %241 {offsets = [0, 0], sizes = [1, 64], strides = [1, 1]} : vector<1x128xf32> to vector<1x64xf32>
    %244 = vector.broadcast %242 : vector<16x1xf32> to vector<16x64xf32>
    %245 = vector.broadcast %243 : vector<1x64xf32> to vector<16x64xf32>
    %246 = arith.mulf %244, %245 : vector<16x64xf32>
    %247 = vector.extract_strided_slice %71 {offsets = [32, 5], sizes = [16, 1], strides = [1, 1]} : vector<64x8xf32> to vector<16x1xf32>
    %248 = vector.extract_strided_slice %241 {offsets = [0, 64], sizes = [1, 64], strides = [1, 1]} : vector<1x128xf32> to vector<1x64xf32>
    %249 = vector.broadcast %247 : vector<16x1xf32> to vector<16x64xf32>
    %250 = vector.broadcast %248 : vector<1x64xf32> to vector<16x64xf32>
    %251 = arith.mulf %249, %250 : vector<16x64xf32>
    %252 = tpu.concatenate %246, %251 in 1 : vector<16x64xf32>, vector<16x64xf32> -> vector<16x128xf32>
    %c5_73 = arith.constant 5 : index
    %c0_74 = arith.constant 0 : index
    %c0_75 = arith.constant 0 : index
    %253 = vector.load %arg5[%c5_73, %c0_74, %c0_75] : memref<8x16x128xf32, #tpu.memory_space<vmem>>, vector<1x16x128xf32>
    %254 = vector.shape_cast %253 : vector<1x16x128xf32> to vector<16x128xf32>
    %255 = vector.shape_cast %252 : vector<16x128xf32> to vector<1x16x128xf32>
    tpu.vector_store %arg5[%c5_73, %c0_74, %c0_75], %255 {strides = array<i32>} : memref<8x16x128xf32, #tpu.memory_space<vmem>>, vector<1x16x128xf32>,
    %256 = vector.extract_strided_slice %71 {offsets = [16, 5], sizes = [16, 1], strides = [1, 1]} : vector<64x8xf32> to vector<16x1xf32>
    %257 = vector.shape_cast %256 : vector<16x1xf32> to vector<16x1xf32>
    %258 = vector.broadcast %257 : vector<16x1xf32> to vector<16x64xf32>
    %259 = vector.extract_strided_slice %71 {offsets = [48, 5], sizes = [16, 1], strides = [1, 1]} : vector<64x8xf32> to vector<16x1xf32>
    %260 = vector.shape_cast %259 : vector<16x1xf32> to vector<16x1xf32>
    %261 = vector.broadcast %260 : vector<16x1xf32> to vector<16x64xf32>
    %262 = tpu.concatenate %258, %261 in 1 : vector<16x64xf32>, vector<16x64xf32> -> vector<16x128xf32>
    %c5_76 = arith.constant 5 : index
    %c0_77 = arith.constant 0 : index
    %c0_78 = arith.constant 0 : index
    %263 = vector.load %arg6[%c5_76, %c0_77, %c0_78] : memref<8x16x128xf32, #tpu.memory_space<vmem>>, vector<1x16x128xf32>
    %264 = vector.shape_cast %263 : vector<1x16x128xf32> to vector<16x128xf32>
    %265 = vector.shape_cast %262 : vector<16x128xf32> to vector<1x16x128xf32>
    tpu.vector_store %arg6[%c5_76, %c0_77, %c0_78], %265 {strides = array<i32>} : memref<8x16x128xf32, #tpu.memory_space<vmem>>, vector<1x16x128xf32>,
    %266 = vector.extract_strided_slice %69 {offsets = [6, 0], sizes = [1, 128], strides = [1, 1]} : vector<8x128xf32> to vector<1x128xf32>
    %267 = vector.broadcast %266 : vector<1x128xf32> to vector<16x128xf32>
    %268 = arith.mulf %267, %72 : vector<16x128xf32>
    %269 = math.exp %268 : vector<16x128xf32>
    %c6 = arith.constant 6 : index
    %c0_79 = arith.constant 0 : index
    %c0_80 = arith.constant 0 : index
    %270 = vector.load %arg4[%c6, %c0_79, %c0_80] : memref<8x16x128xf32, #tpu.memory_space<vmem>>, vector<1x16x128xf32>
    %271 = vector.shape_cast %270 : vector<1x16x128xf32> to vector<16x128xf32>
    %272 = vector.shape_cast %269 : vector<16x128xf32> to vector<1x16x128xf32>
    tpu.vector_store %arg4[%c6, %c0_79, %c0_80], %272 {strides = array<i32>} : memref<8x16x128xf32, #tpu.memory_space<vmem>>, vector<1x16x128xf32>,
    %273 = vector.extract_strided_slice %73 {offsets = [6, 0], sizes = [1, 128], strides = [1, 1]} : vector<8x128xf32> to vector<1x128xf32>
    %274 = vector.extract_strided_slice %71 {offsets = [0, 6], sizes = [16, 1], strides = [1, 1]} : vector<64x8xf32> to vector<16x1xf32>
    %275 = vector.extract_strided_slice %273 {offsets = [0, 0], sizes = [1, 64], strides = [1, 1]} : vector<1x128xf32> to vector<1x64xf32>
    %276 = vector.broadcast %274 : vector<16x1xf32> to vector<16x64xf32>
    %277 = vector.broadcast %275 : vector<1x64xf32> to vector<16x64xf32>
    %278 = arith.mulf %276, %277 : vector<16x64xf32>
    %279 = vector.extract_strided_slice %71 {offsets = [32, 6], sizes = [16, 1], strides = [1, 1]} : vector<64x8xf32> to vector<16x1xf32>
    %280 = vector.extract_strided_slice %273 {offsets = [0, 64], sizes = [1, 64], strides = [1, 1]} : vector<1x128xf32> to vector<1x64xf32>
    %281 = vector.broadcast %279 : vector<16x1xf32> to vector<16x64xf32>
    %282 = vector.broadcast %280 : vector<1x64xf32> to vector<16x64xf32>
    %283 = arith.mulf %281, %282 : vector<16x64xf32>
    %284 = tpu.concatenate %278, %283 in 1 : vector<16x64xf32>, vector<16x64xf32> -> vector<16x128xf32>
    %c6_81 = arith.constant 6 : index
    %c0_82 = arith.constant 0 : index
    %c0_83 = arith.constant 0 : index
    %285 = vector.load %arg5[%c6_81, %c0_82, %c0_83] : memref<8x16x128xf32, #tpu.memory_space<vmem>>, vector<1x16x128xf32>
    %286 = vector.shape_cast %285 : vector<1x16x128xf32> to vector<16x128xf32>
    %287 = vector.shape_cast %284 : vector<16x128xf32> to vector<1x16x128xf32>
    tpu.vector_store %arg5[%c6_81, %c0_82, %c0_83], %287 {strides = array<i32>} : memref<8x16x128xf32, #tpu.memory_space<vmem>>, vector<1x16x128xf32>,
    %288 = vector.extract_strided_slice %71 {offsets = [16, 6], sizes = [16, 1], strides = [1, 1]} : vector<64x8xf32> to vector<16x1xf32>
    %289 = vector.shape_cast %288 : vector<16x1xf32> to vector<16x1xf32>
    %290 = vector.broadcast %289 : vector<16x1xf32> to vector<16x64xf32>
    %291 = vector.extract_strided_slice %71 {offsets = [48, 6], sizes = [16, 1], strides = [1, 1]} : vector<64x8xf32> to vector<16x1xf32>
    %292 = vector.shape_cast %291 : vector<16x1xf32> to vector<16x1xf32>
    %293 = vector.broadcast %292 : vector<16x1xf32> to vector<16x64xf32>
    %294 = tpu.concatenate %290, %293 in 1 : vector<16x64xf32>, vector<16x64xf32> -> vector<16x128xf32>
    %c6_84 = arith.constant 6 : index
    %c0_85 = arith.constant 0 : index
    %c0_86 = arith.constant 0 : index
    %295 = vector.load %arg6[%c6_84, %c0_85, %c0_86] : memref<8x16x128xf32, #tpu.memory_space<vmem>>, vector<1x16x128xf32>
    %296 = vector.shape_cast %295 : vector<1x16x128xf32> to vector<16x128xf32>
    %297 = vector.shape_cast %294 : vector<16x128xf32> to vector<1x16x128xf32>
    tpu.vector_store %arg6[%c6_84, %c0_85, %c0_86], %297 {strides = array<i32>} : memref<8x16x128xf32, #tpu.memory_space<vmem>>, vector<1x16x128xf32>,
    %298 = vector.extract_strided_slice %69 {offsets = [7, 0], sizes = [1, 128], strides = [1, 1]} : vector<8x128xf32> to vector<1x128xf32>
    %299 = vector.broadcast %298 : vector<1x128xf32> to vector<16x128xf32>
    %300 = arith.mulf %299, %72 : vector<16x128xf32>
    %301 = math.exp %300 : vector<16x128xf32>
    %c7 = arith.constant 7 : index
    %c0_87 = arith.constant 0 : index
    %c0_88 = arith.constant 0 : index
    %302 = vector.load %arg4[%c7, %c0_87, %c0_88] : memref<8x16x128xf32, #tpu.memory_space<vmem>>, vector<1x16x128xf32>
    %303 = vector.shape_cast %302 : vector<1x16x128xf32> to vector<16x128xf32>
    %304 = vector.shape_cast %301 : vector<16x128xf32> to vector<1x16x128xf32>
    tpu.vector_store %arg4[%c7, %c0_87, %c0_88], %304 {strides = array<i32>} : memref<8x16x128xf32, #tpu.memory_space<vmem>>, vector<1x16x128xf32>,
    %305 = vector.extract_strided_slice %73 {offsets = [7, 0], sizes = [1, 128], strides = [1, 1]} : vector<8x128xf32> to vector<1x128xf32>
    %306 = vector.extract_strided_slice %71 {offsets = [0, 7], sizes = [16, 1], strides = [1, 1]} : vector<64x8xf32> to vector<16x1xf32>
    %307 = vector.extract_strided_slice %305 {offsets = [0, 0], sizes = [1, 64], strides = [1, 1]} : vector<1x128xf32> to vector<1x64xf32>
    %308 = vector.broadcast %306 : vector<16x1xf32> to vector<16x64xf32>
    %309 = vector.broadcast %307 : vector<1x64xf32> to vector<16x64xf32>
    %310 = arith.mulf %308, %309 : vector<16x64xf32>
    %311 = vector.extract_strided_slice %71 {offsets = [32, 7], sizes = [16, 1], strides = [1, 1]} : vector<64x8xf32> to vector<16x1xf32>
    %312 = vector.extract_strided_slice %305 {offsets = [0, 64], sizes = [1, 64], strides = [1, 1]} : vector<1x128xf32> to vector<1x64xf32>
    %313 = vector.broadcast %311 : vector<16x1xf32> to vector<16x64xf32>
    %314 = vector.broadcast %312 : vector<1x64xf32> to vector<16x64xf32>
    %315 = arith.mulf %313, %314 : vector<16x64xf32>
    %316 = tpu.concatenate %310, %315 in 1 : vector<16x64xf32>, vector<16x64xf32> -> vector<16x128xf32>
    %c7_89 = arith.constant 7 : index
    %c0_90 = arith.constant 0 : index
    %c0_91 = arith.constant 0 : index
    %317 = vector.load %arg5[%c7_89, %c0_90, %c0_91] : memref<8x16x128xf32, #tpu.memory_space<vmem>>, vector<1x16x128xf32>
    %318 = vector.shape_cast %317 : vector<1x16x128xf32> to vector<16x128xf32>
    %319 = vector.shape_cast %316 : vector<16x128xf32> to vector<1x16x128xf32>
    tpu.vector_store %arg5[%c7_89, %c0_90, %c0_91], %319 {strides = array<i32>} : memref<8x16x128xf32, #tpu.memory_space<vmem>>, vector<1x16x128xf32>,
    %320 = vector.extract_strided_slice %71 {offsets = [16, 7], sizes = [16, 1], strides = [1, 1]} : vector<64x8xf32> to vector<16x1xf32>
    %321 = vector.shape_cast %320 : vector<16x1xf32> to vector<16x1xf32>
    %322 = vector.broadcast %321 : vector<16x1xf32> to vector<16x64xf32>
    %323 = vector.extract_strided_slice %71 {offsets = [48, 7], sizes = [16, 1], strides = [1, 1]} : vector<64x8xf32> to vector<16x1xf32>
    %324 = vector.shape_cast %323 : vector<16x1xf32> to vector<16x1xf32>
    %325 = vector.broadcast %324 : vector<16x1xf32> to vector<16x64xf32>
    %326 = tpu.concatenate %322, %325 in 1 : vector<16x64xf32>, vector<16x64xf32> -> vector<16x128xf32>
    %c7_92 = arith.constant 7 : index
    %c0_93 = arith.constant 0 : index
    %c0_94 = arith.constant 0 : index
    %327 = vector.load %arg6[%c7_92, %c0_93, %c0_94] : memref<8x16x128xf32, #tpu.memory_space<vmem>>, vector<1x16x128xf32>
    %328 = vector.shape_cast %327 : vector<1x16x128xf32> to vector<16x128xf32>
    %329 = vector.shape_cast %326 : vector<16x128xf32> to vector<1x16x128xf32>
    tpu.vector_store %arg6[%c7_92, %c0_93, %c0_94], %329 {strides = array<i32>} : memref<8x16x128xf32, #tpu.memory_space<vmem>>, vector<1x16x128xf32>,
    %cst_95 = arith.constant 0.000000e+00 : f32
    %330 = vector.broadcast %cst_95 : f32 to vector<16x128xf32>
    %c0_96 = arith.constant 0 : index
    %c0_97 = arith.constant 0 : index
    %c0_98 = arith.constant 0 : index
    %331 = vector.load %arg4[%c0_96, %c0_97, %c0_98] : memref<8x16x128xf32, #tpu.memory_space<vmem>>, vector<1x16x128xf32>
    %332 = vector.shape_cast %331 : vector<1x16x128xf32> to vector<16x128xf32>
    %333 = arith.mulf %332, %330 : vector<16x128xf32>
    %c0_99 = arith.constant 0 : index
    %c0_100 = arith.constant 0 : index
    %c0_101 = arith.constant 0 : index
    %334 = vector.load %arg5[%c0_99, %c0_100, %c0_101] : memref<8x16x128xf32, #tpu.memory_space<vmem>>, vector<1x16x128xf32>
    %335 = vector.shape_cast %334 : vector<1x16x128xf32> to vector<16x128xf32>
    %336 = arith.addf %333, %335 : vector<16x128xf32>
    %c0_102 = arith.constant 0 : index
    %c0_103 = arith.constant 0 : index
    %c0_104 = arith.constant 0 : index
    %337 = vector.load %arg6[%c0_102, %c0_103, %c0_104] : memref<8x16x128xf32, #tpu.memory_space<vmem>>, vector<1x16x128xf32>
    %338 = vector.shape_cast %337 : vector<1x16x128xf32> to vector<16x128xf32>
    %339 = arith.mulf %336, %338 : vector<16x128xf32>
    %cst_105 = arith.constant dense<0.000000e+00> : vector<128xf32>
    %340 = vector.multi_reduction <add>, %339, %cst_105 [0] : vector<16x128xf32> to vector<128xf32>
    %341 = vector.shape_cast %340 : vector<128xf32> to vector<1x128xf32>
    %c0_106 = arith.constant 0 : index
    %c0_107 = arith.constant 0 : index
    %342 = vector.load %arg7[%c0_106, %c0_107] : memref<8x128xf32, #tpu.memory_space<vmem>>, vector<1x128xf32>
    tpu.vector_store %arg7[%c0_106, %c0_107], %341 {strides = array<i32>} : memref<8x128xf32, #tpu.memory_space<vmem>>, vector<1x128xf32>,
    %c1_108 = arith.constant 1 : index
    %c0_109 = arith.constant 0 : index
    %c0_110 = arith.constant 0 : index
    %343 = vector.load %arg4[%c1_108, %c0_109, %c0_110] : memref<8x16x128xf32, #tpu.memory_space<vmem>>, vector<1x16x128xf32>
    %344 = vector.shape_cast %343 : vector<1x16x128xf32> to vector<16x128xf32>
    %345 = arith.mulf %344, %336 : vector<16x128xf32>
    %c1_111 = arith.constant 1 : index
    %c0_112 = arith.constant 0 : index
    %c0_113 = arith.constant 0 : index
    %346 = vector.load %arg5[%c1_111, %c0_112, %c0_113] : memref<8x16x128xf32, #tpu.memory_space<vmem>>, vector<1x16x128xf32>
    %347 = vector.shape_cast %346 : vector<1x16x128xf32> to vector<16x128xf32>
    %348 = arith.addf %345, %347 : vector<16x128xf32>
    %c1_114 = arith.constant 1 : index
    %c0_115 = arith.constant 0 : index
    %c0_116 = arith.constant 0 : index
    %349 = vector.load %arg6[%c1_114, %c0_115, %c0_116] : memref<8x16x128xf32, #tpu.memory_space<vmem>>, vector<1x16x128xf32>
    %350 = vector.shape_cast %349 : vector<1x16x128xf32> to vector<16x128xf32>
    %351 = arith.mulf %348, %350 : vector<16x128xf32>
    %cst_117 = arith.constant dense<0.000000e+00> : vector<128xf32>
    %352 = vector.multi_reduction <add>, %351, %cst_117 [0] : vector<16x128xf32> to vector<128xf32>
    %353 = vector.shape_cast %352 : vector<128xf32> to vector<1x128xf32>
    %c1_118 = arith.constant 1 : index
    %c0_119 = arith.constant 0 : index
    %354 = vector.load %arg7[%c1_118, %c0_119] : memref<8x128xf32, #tpu.memory_space<vmem>>, vector<1x128xf32>
    tpu.vector_store %arg7[%c1_118, %c0_119], %353 {strides = array<i32>} : memref<8x128xf32, #tpu.memory_space<vmem>>, vector<1x128xf32>,
    %c2_120 = arith.constant 2 : index
    %c0_121 = arith.constant 0 : index
    %c0_122 = arith.constant 0 : index
    %355 = vector.load %arg4[%c2_120, %c0_121, %c0_122] : memref<8x16x128xf32, #tpu.memory_space<vmem>>, vector<1x16x128xf32>
    %356 = vector.shape_cast %355 : vector<1x16x128xf32> to vector<16x128xf32>
    %357 = arith.mulf %356, %348 : vector<16x128xf32>
    %c2_123 = arith.constant 2 : index
    %c0_124 = arith.constant 0 : index
    %c0_125 = arith.constant 0 : index
    %358 = vector.load %arg5[%c2_123, %c0_124, %c0_125] : memref<8x16x128xf32, #tpu.memory_space<vmem>>, vector<1x16x128xf32>
    %359 = vector.shape_cast %358 : vector<1x16x128xf32> to vector<16x128xf32>
    %360 = arith.addf %357, %359 : vector<16x128xf32>
    %c2_126 = arith.constant 2 : index
    %c0_127 = arith.constant 0 : index
    %c0_128 = arith.constant 0 : index
    %361 = vector.load %arg6[%c2_126, %c0_127, %c0_128] : memref<8x16x128xf32, #tpu.memory_space<vmem>>, vector<1x16x128xf32>
    %362 = vector.shape_cast %361 : vector<1x16x128xf32> to vector<16x128xf32>
    %363 = arith.mulf %360, %362 : vector<16x128xf32>
    %cst_129 = arith.constant dense<0.000000e+00> : vector<128xf32>
    %364 = vector.multi_reduction <add>, %363, %cst_129 [0] : vector<16x128xf32> to vector<128xf32>
    %365 = vector.shape_cast %364 : vector<128xf32> to vector<1x128xf32>
    %c2_130 = arith.constant 2 : index
    %c0_131 = arith.constant 0 : index
    %366 = vector.load %arg7[%c2_130, %c0_131] : memref<8x128xf32, #tpu.memory_space<vmem>>, vector<1x128xf32>
    tpu.vector_store %arg7[%c2_130, %c0_131], %365 {strides = array<i32>} : memref<8x128xf32, #tpu.memory_space<vmem>>, vector<1x128xf32>,
    %c3_132 = arith.constant 3 : index
    %c0_133 = arith.constant 0 : index
    %c0_134 = arith.constant 0 : index
    %367 = vector.load %arg4[%c3_132, %c0_133, %c0_134] : memref<8x16x128xf32, #tpu.memory_space<vmem>>, vector<1x16x128xf32>
    %368 = vector.shape_cast %367 : vector<1x16x128xf32> to vector<16x128xf32>
    %369 = arith.mulf %368, %360 : vector<16x128xf32>
    %c3_135 = arith.constant 3 : index
    %c0_136 = arith.constant 0 : index
    %c0_137 = arith.constant 0 : index
    %370 = vector.load %arg5[%c3_135, %c0_136, %c0_137] : memref<8x16x128xf32, #tpu.memory_space<vmem>>, vector<1x16x128xf32>
    %371 = vector.shape_cast %370 : vector<1x16x128xf32> to vector<16x128xf32>
    %372 = arith.addf %369, %371 : vector<16x128xf32>
    %c3_138 = arith.constant 3 : index
    %c0_139 = arith.constant 0 : index
    %c0_140 = arith.constant 0 : index
    %373 = vector.load %arg6[%c3_138, %c0_139, %c0_140] : memref<8x16x128xf32, #tpu.memory_space<vmem>>, vector<1x16x128xf32>
    %374 = vector.shape_cast %373 : vector<1x16x128xf32> to vector<16x128xf32>
    %375 = arith.mulf %372, %374 : vector<16x128xf32>
    %cst_141 = arith.constant dense<0.000000e+00> : vector<128xf32>
    %376 = vector.multi_reduction <add>, %375, %cst_141 [0] : vector<16x128xf32> to vector<128xf32>
    %377 = vector.shape_cast %376 : vector<128xf32> to vector<1x128xf32>
    %c3_142 = arith.constant 3 : index
    %c0_143 = arith.constant 0 : index
    %378 = vector.load %arg7[%c3_142, %c0_143] : memref<8x128xf32, #tpu.memory_space<vmem>>, vector<1x128xf32>
    tpu.vector_store %arg7[%c3_142, %c0_143], %377 {strides = array<i32>} : memref<8x128xf32, #tpu.memory_space<vmem>>, vector<1x128xf32>,
    %c4_144 = arith.constant 4 : index
    %c0_145 = arith.constant 0 : index
    %c0_146 = arith.constant 0 : index
    %379 = vector.load %arg4[%c4_144, %c0_145, %c0_146] : memref<8x16x128xf32, #tpu.memory_space<vmem>>, vector<1x16x128xf32>
    %380 = vector.shape_cast %379 : vector<1x16x128xf32> to vector<16x128xf32>
    %381 = arith.mulf %380, %372 : vector<16x128xf32>
    %c4_147 = arith.constant 4 : index
    %c0_148 = arith.constant 0 : index
    %c0_149 = arith.constant 0 : index
    %382 = vector.load %arg5[%c4_147, %c0_148, %c0_149] : memref<8x16x128xf32, #tpu.memory_space<vmem>>, vector<1x16x128xf32>
    %383 = vector.shape_cast %382 : vector<1x16x128xf32> to vector<16x128xf32>
    %384 = arith.addf %381, %383 : vector<16x128xf32>
    %c4_150 = arith.constant 4 : index
    %c0_151 = arith.constant 0 : index
    %c0_152 = arith.constant 0 : index
    %385 = vector.load %arg6[%c4_150, %c0_151, %c0_152] : memref<8x16x128xf32, #tpu.memory_space<vmem>>, vector<1x16x128xf32>
    %386 = vector.shape_cast %385 : vector<1x16x128xf32> to vector<16x128xf32>
    %387 = arith.mulf %384, %386 : vector<16x128xf32>
    %cst_153 = arith.constant dense<0.000000e+00> : vector<128xf32>
    %388 = vector.multi_reduction <add>, %387, %cst_153 [0] : vector<16x128xf32> to vector<128xf32>
    %389 = vector.shape_cast %388 : vector<128xf32> to vector<1x128xf32>
    %c4_154 = arith.constant 4 : index
    %c0_155 = arith.constant 0 : index
    %390 = vector.load %arg7[%c4_154, %c0_155] : memref<8x128xf32, #tpu.memory_space<vmem>>, vector<1x128xf32>
    tpu.vector_store %arg7[%c4_154, %c0_155], %389 {strides = array<i32>} : memref<8x128xf32, #tpu.memory_space<vmem>>, vector<1x128xf32>,
    %c5_156 = arith.constant 5 : index
    %c0_157 = arith.constant 0 : index
    %c0_158 = arith.constant 0 : index
    %391 = vector.load %arg4[%c5_156, %c0_157, %c0_158] : memref<8x16x128xf32, #tpu.memory_space<vmem>>, vector<1x16x128xf32>
    %392 = vector.shape_cast %391 : vector<1x16x128xf32> to vector<16x128xf32>
    %393 = arith.mulf %392, %384 : vector<16x128xf32>
    %c5_159 = arith.constant 5 : index
    %c0_160 = arith.constant 0 : index
    %c0_161 = arith.constant 0 : index
    %394 = vector.load %arg5[%c5_159, %c0_160, %c0_161] : memref<8x16x128xf32, #tpu.memory_space<vmem>>, vector<1x16x128xf32>
    %395 = vector.shape_cast %394 : vector<1x16x128xf32> to vector<16x128xf32>
    %396 = arith.addf %393, %395 : vector<16x128xf32>
    %c5_162 = arith.constant 5 : index
    %c0_163 = arith.constant 0 : index
    %c0_164 = arith.constant 0 : index
    %397 = vector.load %arg6[%c5_162, %c0_163, %c0_164] : memref<8x16x128xf32, #tpu.memory_space<vmem>>, vector<1x16x128xf32>
    %398 = vector.shape_cast %397 : vector<1x16x128xf32> to vector<16x128xf32>
    %399 = arith.mulf %396, %398 : vector<16x128xf32>
    %cst_165 = arith.constant dense<0.000000e+00> : vector<128xf32>
    %400 = vector.multi_reduction <add>, %399, %cst_165 [0] : vector<16x128xf32> to vector<128xf32>
    %401 = vector.shape_cast %400 : vector<128xf32> to vector<1x128xf32>
    %c5_166 = arith.constant 5 : index
    %c0_167 = arith.constant 0 : index
    %402 = vector.load %arg7[%c5_166, %c0_167] : memref<8x128xf32, #tpu.memory_space<vmem>>, vector<1x128xf32>
    tpu.vector_store %arg7[%c5_166, %c0_167], %401 {strides = array<i32>} : memref<8x128xf32, #tpu.memory_space<vmem>>, vector<1x128xf32>,
    %c6_168 = arith.constant 6 : index
    %c0_169 = arith.constant 0 : index
    %c0_170 = arith.constant 0 : index
    %403 = vector.load %arg4[%c6_168, %c0_169, %c0_170] : memref<8x16x128xf32, #tpu.memory_space<vmem>>, vector<1x16x128xf32>
    %404 = vector.shape_cast %403 : vector<1x16x128xf32> to vector<16x128xf32>
    %405 = arith.mulf %404, %396 : vector<16x128xf32>
    %c6_171 = arith.constant 6 : index
    %c0_172 = arith.constant 0 : index
    %c0_173 = arith.constant 0 : index
    %406 = vector.load %arg5[%c6_171, %c0_172, %c0_173] : memref<8x16x128xf32, #tpu.memory_space<vmem>>, vector<1x16x128xf32>
    %407 = vector.shape_cast %406 : vector<1x16x128xf32> to vector<16x128xf32>
    %408 = arith.addf %405, %407 : vector<16x128xf32>
    %c6_174 = arith.constant 6 : index
    %c0_175 = arith.constant 0 : index
    %c0_176 = arith.constant 0 : index
    %409 = vector.load %arg6[%c6_174, %c0_175, %c0_176] : memref<8x16x128xf32, #tpu.memory_space<vmem>>, vector<1x16x128xf32>
    %410 = vector.shape_cast %409 : vector<1x16x128xf32> to vector<16x128xf32>
    %411 = arith.mulf %408, %410 : vector<16x128xf32>
    %cst_177 = arith.constant dense<0.000000e+00> : vector<128xf32>
    %412 = vector.multi_reduction <add>, %411, %cst_177 [0] : vector<16x128xf32> to vector<128xf32>
    %413 = vector.shape_cast %412 : vector<128xf32> to vector<1x128xf32>
    %c6_178 = arith.constant 6 : index
    %c0_179 = arith.constant 0 : index
    %414 = vector.load %arg7[%c6_178, %c0_179] : memref<8x128xf32, #tpu.memory_space<vmem>>, vector<1x128xf32>
    tpu.vector_store %arg7[%c6_178, %c0_179], %413 {strides = array<i32>} : memref<8x128xf32, #tpu.memory_space<vmem>>, vector<1x128xf32>,
    %c7_180 = arith.constant 7 : index
    %c0_181 = arith.constant 0 : index
    %c0_182 = arith.constant 0 : index
    %415 = vector.load %arg4[%c7_180, %c0_181, %c0_182] : memref<8x16x128xf32, #tpu.memory_space<vmem>>, vector<1x16x128xf32>
    %416 = vector.shape_cast %415 : vector<1x16x128xf32> to vector<16x128xf32>
    %417 = arith.mulf %416, %408 : vector<16x128xf32>
    %c7_183 = arith.constant 7 : index
    %c0_184 = arith.constant 0 : index
    %c0_185 = arith.constant 0 : index
    %418 = vector.load %arg5[%c7_183, %c0_184, %c0_185] : memref<8x16x128xf32, #tpu.memory_space<vmem>>, vector<1x16x128xf32>
    %419 = vector.shape_cast %418 : vector<1x16x128xf32> to vector<16x128xf32>
    %420 = arith.addf %417, %419 : vector<16x128xf32>
    %c7_186 = arith.constant 7 : index
    %c0_187 = arith.constant 0 : index
    %c0_188 = arith.constant 0 : index
    %421 = vector.load %arg6[%c7_186, %c0_187, %c0_188] : memref<8x16x128xf32, #tpu.memory_space<vmem>>, vector<1x16x128xf32>
    %422 = vector.shape_cast %421 : vector<1x16x128xf32> to vector<16x128xf32>
    %423 = arith.mulf %420, %422 : vector<16x128xf32>
    %cst_189 = arith.constant dense<0.000000e+00> : vector<128xf32>
    %424 = vector.multi_reduction <add>, %423, %cst_189 [0] : vector<16x128xf32> to vector<128xf32>
    %425 = vector.shape_cast %424 : vector<128xf32> to vector<1x128xf32>
    %c7_190 = arith.constant 7 : index
    %c0_191 = arith.constant 0 : index
    %426 = vector.load %arg7[%c7_190, %c0_191] : memref<8x128xf32, #tpu.memory_space<vmem>>, vector<1x128xf32>
    tpu.vector_store %arg7[%c7_190, %c0_191], %425 {strides = array<i32>} : memref<8x128xf32, #tpu.memory_space<vmem>>, vector<1x128xf32>,
    %c0_192 = arith.constant 0 : index
    %c0_193 = arith.constant 0 : index
    %427 = vector.load %arg7[%c0_192, %c0_193] : memref<8x128xf32, #tpu.memory_space<vmem>>, vector<8x128xf32>
    %c6_194 = arith.constant 6 : index
    %c0_195 = arith.constant 0 : index
    %428 = vector.load %arg2[%c6_194, %c0_195] : memref<32x128xf32, #tpu.memory_space<vmem>>, vector<1x128xf32>
    %429 = vector.broadcast %428 : vector<1x128xf32> to vector<8x128xf32>
    %430 = arith.mulf %56, %429 : vector<8x128xf32>
    %431 = arith.addf %427, %430 : vector<8x128xf32>
    %cst_196 = arith.constant 0.000000e+00 : f32
    %432 = vector.broadcast %cst_196 : f32 to vector<8x128xf32>
    %433 = arith.subf %432, %9 : vector<8x128xf32>
    %434 = math.exp %433 : vector<8x128xf32>
    %cst_197 = arith.constant 1.000000e+00 : f32
    %435 = vector.broadcast %cst_197 : f32 to vector<8x128xf32>
    %436 = arith.addf %435, %434 : vector<8x128xf32>
    %437 = tpu.reciprocal %436 {approx = true} : vector<8x128xf32> -> vector<8x128xf32>
    %438 = arith.mulf %9, %437 : vector<8x128xf32>
    %439 = arith.mulf %431, %438 : vector<8x128xf32>
    %440 = vector.extract_strided_slice %439 {offsets = [0, 0], sizes = [8, 64], strides = [1, 1]} : vector<8x128xf32> to vector<8x64xf32>
    %441 = vector.extract_strided_slice %439 {offsets = [0, 64], sizes = [8, 64], strides = [1, 1]} : vector<8x128xf32> to vector<8x64xf32>
    %442 = tpu.concatenate %440, %441 in 0 : vector<8x64xf32>, vector<8x64xf32> -> vector<16x64xf32>
    %443 = arith.truncf %442 : vector<16x64xf32> to vector<16x64xbf16>
    %c320 = arith.constant 320 : index
    %c0_198 = arith.constant 0 : index
    %444 = vector.load %arg1[%c320, %c0_198] : memref<384x128xbf16, #tpu.memory_space<vmem>>, vector<64x128xbf16>
    %cst_199 = arith.constant dense<0.000000e+00> : vector<16x128xf32>
    %445 = tpu.matmul %443, %444, %cst_199 {dimension_numbers = #tpu.dot_dimension_numbers<[1], [0], [0], [1], [0, 0, 1, 1], [], []>} : vector<16x64xbf16>, vector<64x128xbf16>, vector<16x128xf32> -> vector<16x128xf32>
    %446 = arith.addf %445, %0 : vector<16x128xf32>
    %cst_200 = arith.constant dense<0.000000e+00> : vector<16xf32>
    %447 = vector.multi_reduction <add>, %446, %cst_200 [1] : vector<16x128xf32> to vector<16xf32>
    %448 = vector.shape_cast %447 : vector<16xf32> to vector<16x1xf32>
    %cst_201 = arith.constant 3.125000e-02 : f32
    %449 = vector.broadcast %cst_201 : f32 to vector<16x1xf32>
    %450 = arith.mulf %448, %449 : vector<16x1xf32>
    %c26 = arith.constant 26 : index
    %c0_202 = arith.constant 0 : index
    %451 = vector.load %arg2[%c26, %c0_202] : memref<32x128xf32, #tpu.memory_space<vmem>>, vector<1x128xf32>
    %452 = vector.broadcast %450 : vector<16x1xf32> to vector<16x128xf32>
    %453 = vector.broadcast %451 : vector<1x128xf32> to vector<16x128xf32>
    %454 = arith.mulf %452, %453 : vector<16x128xf32>
    %455 = arith.subf %446, %454 : vector<16x128xf32>
    %456 = arith.mulf %455, %455 : vector<16x128xf32>
    %cst_203 = arith.constant dense<0.000000e+00> : vector<16xf32>
    %457 = vector.multi_reduction <add>, %456, %cst_203 [1] : vector<16x128xf32> to vector<16xf32>
    %458 = vector.shape_cast %457 : vector<16xf32> to vector<16x1xf32>
    %cst_204 = arith.constant 3.125000e-02 : f32
    %459 = vector.broadcast %cst_204 : f32 to vector<16x1xf32>
    %460 = arith.mulf %458, %459 : vector<16x1xf32>
    %cst_205 = arith.constant 9.99999974E-6 : f32
    %461 = vector.broadcast %cst_205 : f32 to vector<16x1xf32>
    %462 = arith.addf %460, %461 : vector<16x1xf32>
    %463 = math.rsqrt %462 : vector<16x1xf32>
    %464 = vector.broadcast %463 : vector<16x1xf32> to vector<16x128xf32>
    %465 = arith.mulf %455, %464 : vector<16x128xf32>
    %c24 = arith.constant 24 : index
    %c0_206 = arith.constant 0 : index
    %466 = vector.load %arg2[%c24, %c0_206] : memref<32x128xf32, #tpu.memory_space<vmem>>, vector<1x128xf32>
    %467 = vector.broadcast %466 : vector<1x128xf32> to vector<16x128xf32>
    %468 = arith.mulf %465, %467 : vector<16x128xf32>
    %c25 = arith.constant 25 : index
    %c0_207 = arith.constant 0 : index
    %469 = vector.load %arg2[%c25, %c0_207] : memref<32x128xf32, #tpu.memory_space<vmem>>, vector<1x128xf32>
    %470 = vector.broadcast %469 : vector<1x128xf32> to vector<16x128xf32>
    %471 = arith.addf %468, %470 : vector<16x128xf32>
    %c0_208 = arith.constant 0 : index
    %c0_209 = arith.constant 0 : index
    %472 = vector.load %arg3[%c0_208, %c0_209] : memref<16x128xf32, #tpu.memory_space<vmem>>, vector<16x128xf32>
    tpu.vector_store %arg3[%c0_208, %c0_209], %471 {strides = array<i32>} : memref<16x128xf32, #tpu.memory_space<vmem>>, vector<16x128xf32>,
    return
  }
}

</mosaic_0001>

<bundles_post_ra>
// kernel: mamba_block_forward.1
= control target key start
LH: loop header
LB: loop body
LE: loop exit
PB: predicated region body
PF: predicated region fallthrough
CT: control target
= control target key end

     0   :  { %8 = vsyncpa [#allocation7], 0  ;;  %s1527_s12 = smov [#allocation6]   ;;  %s2121_s0 = inlined_call_operand.vmem [shape: f32[16,128], index: 0, kind: input, shape index: {}]   ;;  %s2122_s1 = inlined_call_operand.hbm [shape: bf16[384,128], index: 1, kind: input, shape index: {}]   ;;  %s2123_s2 = inlined_call_operand.vmem [shape: f32[32,128], index: 2, kind: input, shape index: {}]   ;;  %s2124_s3 = inlined_call_operand.vmem [shape: f32[16,128], index: 3, kind: output, shape index: {}]  }
   0x1   :  { %s16_s13 = sshll.u32 %s1527_s12, 4  ;;  %s1503_s16 = scalar_lea.hbm %s2122_s1, 3072  ;;  %s17_s13 = int_to_ptr.vmem [resolvable:$true] %s16_s13 }
   0x2   :  { %p1504_p0 = scmp.ne.s32.totalorder %s2122_s1, %s1503_s16  ;;  %p1507_p1 = scmp.lt.u32.totalorder %s1503_s16, %s2122_s1 }
   0x4   :  { %p1509_p2 = pnand %p1507_p1, %p1504_p0 }
   0x6   :  { %1512 = shalt.err (!%p1509_p2)
}
   0x7   :  { %s1513_s21 = scalar_lea.vmem %s17_s13, 3072  ;;  %p1518_p4 = scmp.lt.s32.totalorder %s17_s13, %s17_s13 }
   0x8   :  { %p1514_p3 = scmp.ne.s32.totalorder %s17_s13, %s1513_s21  ;;  %p1519_p5 = scmp.lt.s32.totalorder %s1513_s21, %s1513_s21 }
   0xa   :  { %p1520_p6 = por %p1519_p5, %p1518_p4 }
   0xc   :  { %p1521_p7 = pnand %p1520_p6, %p1514_p3 }
   0xe   :  { %1524 = shalt.err (!%p1521_p7)
}
   0xf   :  { %s1528_s22 = smov 64   ;;  %s1529_s23 = smov 4  }
  0x10   :  { %22 = dma.hbm_to_vmem [thread:$0]  %s2122_s1, 3072, %s17_s13, [#allocation7], %s1528_s22, %s1528_s22, %s1529_s23  }
  0x11   :  { %1525 = dma.done.wait [#allocation7], 3072  }
  0x12   :  { %1526 = vsyncadd [#allocation7], 4294964224  ;;  %v2127_v0 = vmov 0.0   ;;  %vm1531_vm0 = vmmov 0   ;;  %v1429_v1 = vld [vmem:[#allocation6] sm:$0xff]   ;;  %v1430_v2 = vld [vmem:[#allocation6 + $0x8] sm:$0xff]   ;;  %v148_v25 = vlaneseq }
  0x13   :  { %1299 = vmatprep.subr.bf16.mxu0 %v2127_v0  ;;  %1315 = vmatprep.mubr.msk.bf16.mxu0 %vm1531_vm0, %v2127_v0  ;;  %v1431_v3 = vld [vmem:[#allocation6 + $0x10] sm:$0xff]   ;;  %v1432_v4 = vld [vmem:[#allocation6 + $0x18] sm:$0xff]   ;;  %v1433_v5 = vld [vmem:[#allocation6 + $0x20] sm:$0xff]   ;;  %vm141_vm1 = vcmask 523264   ;;  %v1532_v58 = vmov 3   ;;  %v1533_v59 = vmov 0  }
  0x14   :  { %1319 = vmatprep.subr.bf16.mxu1 %v2127_v0  ;;  %1335 = vmatprep.mubr.msk.bf16.mxu1 %vm1531_vm0, %v2127_v0  ;;  %v1434_v6 = vld [vmem:[#allocation6 + $0x28] sm:$0xff]   ;;  %v1435_v7 = vld [vmem:[#allocation6 + $0x30] sm:$0xff]   ;;  %v1436_v8 = vld [vmem:[#allocation6 + $0x38] sm:$0xff]   ;;  %v1607_v26 = vshrl.u32 %v148_v25, 7 }
  0x15   :  { %1300 = vmatpush3.bf16.msra.mxu0 %v1429_v1  ;;  %v29_v9 = vld [vmem:[%s2121_s0] sm:$0xff]  ;;  %v30_v10 = vld [vmem:[%s2121_s0 + $0x8] sm:$0xff]  ;;  %v1438_v16 = vld [vmem:[#allocation6 + $0x48] sm:$0xff]   ;;  %1376 = vset.pattern.permute.xlu0 %v1532_v58 }
  0x16   :  { %1301 = vmatprep.subr.bf16.mxu0 %v2127_v0  ;;  %v31_v11 = vpack.c.bf16 %v30_v10, %v29_v9  ;;  %v1437_v13 = vld [vmem:[#allocation6 + $0x40] sm:$0xff]   ;;  %v1439_v18 = vld [vmem:[#allocation6 + $0x50] sm:$0xff]   ;;  %v1440_v19 = vld [vmem:[#allocation6 + $0x58] sm:$0xff]   ;;  %vm156_vm2 = vcmp.ge.s32.totalorder %v1607_v26, 1  ;;  %vm168_vm3 = vcmp.ge.s32.totalorder %v1607_v26, 2  ;;  %vm180_vm4 = vcmp.ge.s32.totalorder %v1607_v26, 3  ;;  %1374 = vset.pattern.permute.xlu1 %v1533_v59 }
  0x17   :  { %1320 = vmatpush3.bf16.msra.mxu1 %v1437_v13  ;;  %v1441_v20 = vld [vmem:[#allocation6 + $0x60] sm:$0xff]   ;;  %v1442_v21 = vld [vmem:[#allocation6 + $0x68] sm:$0xff]   ;;  %v1443_v22 = vld [vmem:[#allocation6 + $0x70] sm:$0xff]   ;;  %v1537_v13 = vmov 6  }
  0x18   :  { %1321 = vmatprep.subr.bf16.mxu1 %v2127_v0  ;;  %v1444_v23 = vld [vmem:[#allocation6 + $0x78] sm:$0xff]   ;;  %v1445_v24 = vld [vmem:[#allocation6 + $0x80] sm:$0xff]   ;;  %v1446_v55 = vld [vmem:[#allocation6 + $0x88] sm:$0xff]  }
  0x19   :  { %1302 = vmatpush3.bf16.msra.mxu0 %v1430_v2  ;;  %v1244_v28 = vld [vmem:[%s2123_s2 + $0x3] ss:$0 sm:$0xff]  ;;  %v1245_v30 = vld [vmem:[%s2123_s2 + $0x2] ss:$0 sm:$0xff]  ;;  %v1246_v34 = vld [vmem:[%s2123_s2 + $0x1] ss:$0 sm:$0xff] }
  0x1a   :  { %1303 = vmatprep.subr.bf16.mxu0 %v2127_v0  ;;  %v1247_v39 = vld [vmem:[%s2123_s2] ss:$0 sm:$0xff]  ;;  %v1248_v45 = vld [vmem:[%s2123_s2 + $0x4] ss:$0 sm:$0xff]  ;;  %v1447_v56 = vld [vmem:[#allocation6 + $0x90] sm:$0xff]  }
  0x1b   :  { %1322 = vmatpush3.bf16.msra.mxu1 %v1438_v16  ;;  %v1448_v57 = vld [vmem:[#allocation6 + $0x98] sm:$0xff]   ;;  %v1539_v16 = vmov 5  }
  0x1c   :  { %1323 = vmatprep.subr.bf16.mxu1 %v2127_v0 }
  0x1d   :  { %1304 = vmatpush3.bf16.msra.mxu0 %v1431_v3 }
  0x1e   :  { %1305 = vmatprep.subr.bf16.mxu0 %v2127_v0 }
  0x1f   :  { %1324 = vmatpush3.bf16.msra.mxu1 %v1439_v18 }
  0x20   :  { %1325 = vmatprep.subr.bf16.mxu1 %v2127_v0 }
  0x21   :  { %1306 = vmatpush3.bf16.msra.mxu0 %v1432_v4 }
  0x22   :  { %1307 = vmatprep.subr.bf16.mxu0 %v2127_v0 }
  0x23   :  { %1326 = vmatpush3.bf16.msra.mxu1 %v1440_v19 }
  0x24   :  { %1327 = vmatprep.subr.bf16.mxu1 %v2127_v0 }
  0x25   :  { %1308 = vmatpush3.bf16.msra.mxu0 %v1433_v5  ;;  %v1534_v5 = vmov 2  }
  0x26   :  { %1309 = vmatprep.subr.bf16.mxu0 %v2127_v0 }
  0x27   :  { %1328 = vmatpush3.bf16.msra.mxu1 %v1441_v20 }
  0x28   :  { %1329 = vmatprep.subr.bf16.mxu1 %v2127_v0 }
  0x29   :  { %1310 = vmatpush3.bf16.msra.mxu0 %v1434_v6 }
  0x2a   :  { %1311 = vmatprep.subr.bf16.mxu0 %v2127_v0 }
  0x2b   :  { %1330 = vmatpush3.bf16.msra.mxu1 %v1442_v21 }
  0x2c   :  { %1331 = vmatprep.subr.bf16.mxu1 %v2127_v0 }
  0x2d   :  { %1312 = vmatpush3.bf16.msra.mxu0 %v1435_v7 }
  0x2e   :  { %1313 = vmatprep.subr.bf16.mxu0 %v2127_v0 }
  0x2f   :  { %1332 = vmatpush3.bf16.msra.mxu1 %v1443_v22 }
  0x30   :  { %1333 = vmatprep.subr.bf16.mxu1 %v2127_v0 }
  0x31   :  { %1314 = vmatpush3.bf16.msra.mxu0 %v1436_v8  ;;  %v1535_v8 = vmov 4  }
  0x33   :  { %1334 = vmatpush3.bf16.msra.mxu1 %v1444_v23 }
  0x34   :  { %1316 = vmatmul.mubr.bf16.vlgmr.msra.gmra.mrb[0].mxu0 %v31_v11  ;;  %1349 = vmatprep.subr.bf16.mxu1 %v2127_v0  ;;  %v1536_v11 = vmov 7  }
  0x35   :  { %1341 = vmatprep.mubr.bf16.mxu0 %v1445_v24 }
 0x107   :  { %v1593_v12 = vpop.f32.mrb[0].mxu0 }
 0x108   :  { %v1317_v14 = vpop.f32.mrb[1].mxu0 }
 0x109   :  { %v1595_v15 = vpop.f32.mrb[2].mxu0  ;;  %v1538_v14 = vmov 1  }
 0x10a   :  { %2131 = vst [vmem:[#allocation9_spill] sm:$0xff] %v1595_v15  ;;  %138 = vrot.lane.b32.xlu0 %v1595_v15, %s1528_s22  ;;  %v1318_v17 = vpop.f32.mrb[3].mxu0 }
 0x10b   :  { %v1249_v17 = vld [vmem:[%s2123_s2 + $0x5] ss:$0 sm:$0xff] }
 0x17c   :  { %v139_v27 = vpop.permute.xlu0 %138 }
 0x17d   :  { %v142_v29 = vsel %vm141_vm1, %v1593_v12, %v139_v27 }
 0x17e   :  { %v157_v31 = vrot.slane %v142_v29, 7  ;;  %v169_v32 = vrot.slane %v142_v29, 6  ;;  %v181_v33 = vrot.slane %v142_v29, 5  ;;  %v155_v37 = vmul.f32 %v1244_v28, %v142_v29 }
 0x180   :  { %v160_v35 = vsel %vm156_vm2, %v157_v31, 0.0  ;;  %v172_v36 = vsel %vm168_vm3, %v169_v32, 0.0  ;;  %v184_v40 = vsel %vm180_vm4, %v181_v33, 0.0  ;;  %v617_v31 = vsub.s32 3, %v1607_v26 }
 0x181   :  { %v166_v38 = vmul.f32 %v1245_v30, %v160_v35  ;;  %v178_v42 = vmul.f32 %v1246_v34, %v172_v36  ;;  %v190_v44 = vmul.f32 %v1247_v39, %v184_v40  ;;  %v554_v36 = vsub.s32 2, %v1607_v26 }
 0x183   :  { %v167_v41 = vadd.f32 %v166_v38, %v155_v37  ;;  %v2125_v37 = vsub.s32 7, %v1607_v26 }
 0x185   :  { %v179_v43 = vadd.f32 %v178_v42, %v167_v41 }
 0x187   :  { %v191_v46 = vadd.f32 %v190_v44, %v179_v43  ;;  %v680_v44 = vsub.s32 4, %v1607_v26 }
 0x189   :  { %v197_v47 = vadd.f32 %v1248_v45, %v191_v46 }
 0x18b   :  { %v198_v48 = vsub.f32 0.0, %v197_v47 }
 0x18d   :  { %v199_v49 = vmul.f32 1.442695, %v198_v48 }
 0x18f   :  { %1453 = vpow2.f32 %v199_v49  ;;  %v2126_v49 = vsub.s32 6, %v1607_v26 }
 0x199   :  { %v1454_v50 = vpop.eup %1453 }
 0x19a   :  { %v201_v51 = vadd.f32 1.0, %v1454_v50 }
 0x19c   :  { %1455 = vrcp.f32 %v201_v51 }
 0x1a6   :  { %v1456_v52 = vpop.eup %1455 }
 0x1a7   :  { %v1629_v53 = vmul.f32 %v1456_v52, %v197_v47 }
 0x1a9   :  { %2132 = vst [vmem:[#allocation10_spill] sm:$0xff] %v1629_v53  ;;  %v204_v54 = vpack.c.bf16 %v1629_v53, %v1629_v53 }
 0x1ab   :  { %1336 = vmatmul.mubr.bf16.vlgmr.msra.gmra.mrb[0].mxu1 %v204_v54  ;;  %1339 = vmatprep.subr.bf16.mxu0 %v204_v54 }
 0x1ac   :  { %1340 = vmatpush3.bf16.xpose.msra.mxu0 %v204_v54  ;;  %1357 = vmatprep.mubr.msk.bf16.mxu1 %vm1531_vm0, %v2127_v0 }
 0x1b3   :  { %1342 = vmatmul.mubr.bf16.vlgmr.msra.gmra.mrb[4].mxu0 %v1446_v55 }
 0x1b4   :  { %1345 = vmatprep.mubr.bf16.mxu0 %v1447_v56 }
 0x1bb   :  { %1346 = vmatmul.mubr.bf16.gmra.mrb[8].mxu0 %v1448_v57 }
 0x27e   :  { %v1637_v60 = vpop.f32.mrb[0].mxu1 }
 0x27f   :  { %v1337_v61 = vpop.f32.mrb[1].mxu1  ;;  %v309_v18 = vadd.f32 %v1249_v17, %v1637_v60 }
 0x280   :  { %v311_v62 = vpop.f32.mrb[2].mxu1  ;;  %v423_v61 = vsub.s32 0, %v1607_v26 }
 0x281   :  { %v1338_v63 = vpop.f32.mrb[3].mxu1  ;;  %v315_v19 = vmul.f32 1.442695, %v309_v18  ;;  %vm314_vm5 = vcmp.gt.f32.partialorder %v309_v18, 20.0 }
 0x283   :  { %1457 = vpow2.f32 %v315_v19  ;;  %v743_v19 = vsub.s32 5, %v1607_v26 }
 0x286   :  { %v1639_v1 = vpop.f32.mrb[4].mxu0 }
 0x287   :  { %658 = vperm.xlu0 %1376, %v1639_v1   ;;  %467 = vperm.xlu1 %1374, %v1639_v1   ;;  %v1643_v2 = vpop.f32.mrb[5].mxu0 }
 0x288   :  { %v1645_v3 = vpop.f32.mrb[6].mxu0 }
 0x289   :  { %v390_v4 = vpop.f32.mrb[7].mxu0 }
 0x28b   :  { %1378 = vset.pattern.permute.xlu0 %v1533_v59  ;;  %1375 = vset.pattern.permute.xlu1 %v1534_v5 }
 0x28c   :  { %595 = vperm.xlu1 %1375, %v1639_v1   ;;  %435 = vperm.xlu0 %1378, %v1643_v2  }
 0x28d   :  { %v1458_v20 = vpop.eup %1457 }
 0x28e   :  { %v1651_v6 = vpop.f32.mrb[8].mxu0  ;;  %v317_v21 = vadd.f32 1.0, %v1458_v20 }
 0x28f   :  { %v1653_v7 = vpop.f32.mrb[9].mxu0 }
 0x290   :  { %1377 = vset.pattern.permute.xlu1 %v1535_v8  ;;  %1380 = vset.pattern.permute.xlu0 %v1532_v58  ;;  %v1657_v9 = vpop.f32.mrb[10].mxu0  ;;  %1459 = vlog2.f32 %v317_v21 }
 0x291   :  { %721 = vperm.xlu1 %1377, %v1639_v1   ;;  %629 = vperm.xlu0 %1380, %v1643_v2   ;;  %v1661_v10 = vpop.f32.mrb[11].mxu0 }
 0x295   :  { %1379 = vset.pattern.permute.xlu1 %v1534_v5  ;;  %1383 = vset.pattern.permute.xlu0 %v1536_v11 }
 0x296   :  { %566 = vperm.xlu1 %1379, %v1643_v2   ;;  %881 = vperm.xlu0 %1383, %v1643_v2  }
 0x29a   :  { %1381 = vset.pattern.permute.xlu1 %v1535_v8  ;;  %1384 = vset.pattern.permute.xlu0 %v1533_v59  ;;  %v1460_v22 = vpop.eup %1459 }
 0x29b   :  { %692 = vperm.xlu1 %1381, %v1643_v2   ;;  %472 = vperm.xlu0 %1384, %v1645_v3   ;;  %v319_v23 = vmul.f32 0.6931472, %v1460_v22 }
 0x29d   :  { %v1739_v27 = vsel %vm314_vm5, %v309_v18, %v319_v23 }
 0x29e   :  { %v1745_v28 = vmul.f32 %v1739_v27, %v1629_v53 }
 0x29f   :  { %1382 = vset.pattern.permute.xlu1 %v1537_v13  ;;  %1386 = vset.pattern.permute.xlu0 %v1534_v5 }
 0x2a0   :  { %818 = vperm.xlu1 %1382, %v1643_v2   ;;  %599 = vperm.xlu0 %1386, %v1645_v3   ;;  %v1757_v32 = vrot.slane %v1745_v28, %v617_v31  ;;  %v1771_v38 = vrot.slane %v1745_v28, %v554_v36  ;;  %v1776_v39 = vrot.slane %v1745_v28, %v2125_v37 }
 0x2a1   :  { %v1790_v45 = vrot.slane %v1745_v28, %v680_v44  ;;  %v1803_v50 = vrot.slane %v1745_v28, %v2126_v49  ;;  %v1832_v62 = vrot.slane %v1745_v28, %v423_v61  ;;  %v1856_v20 = vrot.slane %v1745_v28, %v743_v19 }
 0x2a4   :  { %1385 = vset.pattern.permute.xlu1 %v1538_v14  ;;  %1388 = vset.pattern.permute.xlu0 %v1535_v8 }
 0x2a5   :  { %536 = vperm.xlu1 %1385, %v1645_v3   ;;  %725 = vperm.xlu0 %1388, %v1645_v3  }
 0x2a9   :  { %1387 = vset.pattern.permute.xlu1 %v1532_v58  ;;  %1392 = vset.pattern.permute.xlu0 %v1534_v5 }
 0x2aa   :  { %662 = vperm.xlu1 %1387, %v1645_v3   ;;  %570 = vperm.xlu0 %1392, %v390_v4  }
 0x2ae   :  { %1389 = vset.pattern.permute.xlu1 %v1539_v16  ;;  %1394 = vset.pattern.permute.xlu0 %v1535_v8 }
 0x2af   :  { %788 = vperm.xlu1 %1389, %v1645_v3   ;;  %696 = vperm.xlu0 %1394, %v390_v4  }
 0x2b3   :  { %1390 = vset.pattern.permute.xlu1 %v1533_v59  ;;  %1396 = vset.pattern.permute.xlu0 %v1537_v13 }
 0x2b4   :  { %822 = vperm.xlu0 %1396, %v390_v4   ;;  %440 = vperm.xlu1 %1390, %v390_v4  }
 0x2b8   :  { %1414 = vset.pattern.permute.xlu0 %v1532_v58  ;;  %1391 = vset.pattern.permute.xlu1 %v1538_v14 }
 0x2b9   :  { %507 = vperm.xlu1 %1391, %v390_v4   ;;  %670 = vperm.xlu0 %1414, %v1657_v9  }
 0x2bd   :  { %1393 = vset.pattern.permute.xlu1 %v1532_v58  ;;  %1418 = vset.pattern.permute.xlu0 %v1537_v13 }
 0x2be   :  { %633 = vperm.xlu1 %1393, %v390_v4   ;;  %851 = vperm.xlu0 %1418, %v1645_v3  }
 0x2c2   :  { %1395 = vset.pattern.permute.xlu1 %v1539_v16  ;;  %1419 = vset.pattern.permute.xlu0 %v1538_v14 }
 0x2c3   :  { %759 = vperm.xlu1 %1395, %v390_v4   ;;  %503 = vperm.xlu0 %1419, %v1643_v2  }
 0x2c7   :  { %1397 = vset.pattern.permute.xlu1 %v1536_v11  ;;  %532 = vperm.xlu0 %1419, %v1639_v1  }
 0x2c8   :  { %885 = vperm.xlu1 %1397, %v390_v4   ;;  %v491_v4 = vsub.s32 1, %v1607_v26 }
 0x2cb   :  { %544 = vperm.xlu0 %1419, %v1657_v9  }
 0x2cc   :  { %1398 = vset.pattern.permute.xlu1 %v1533_v59 }
 0x2cd   :  { %477 = vperm.xlu1 %1398, %v1651_v6  }
 0x2cf   :  { %521 = vperm.xlu0 %1419, %v1661_v10  }
 0x2d1   :  { %1399 = vset.pattern.permute.xlu1 %v1538_v14 }
 0x2d2   :  { %540 = vperm.xlu1 %1399, %v1651_v6  }
 0x2d3   :  { %1422 = vset.pattern.permute.xlu0 %v1532_v58 }
 0x2d4   :  { %647 = vperm.xlu0 %1422, %v1661_v10  }
 0x2d6   :  { %1400 = vset.pattern.permute.xlu1 %v1534_v5 }
 0x2d7   :  { %603 = vperm.xlu1 %1400, %v1651_v6  }
 0x2d8   :  { %1425 = vset.pattern.permute.xlu0 %v1536_v11 }
 0x2d9   :  { %910 = vperm.xlu0 %1425, %v1639_v1  }
 0x2db   :  { %1401 = vset.pattern.permute.xlu1 %v1532_v58 }
 0x2dc   :  { %666 = vperm.xlu1 %1401, %v1651_v6  }
 0x2dd   :  { %1426 = vset.pattern.permute.xlu0 %v1539_v16 }
 0x2de   :  { %755 = vperm.xlu0 %1426, %v1643_v2  }
 0x2e0   :  { %1402 = vset.pattern.permute.xlu1 %v1535_v8 }
 0x2e1   :  { %729 = vperm.xlu1 %1402, %v1651_v6  }
 0x2e2   :  { %784 = vperm.xlu0 %1426, %v1639_v1  }
 0x2e5   :  { %1403 = vset.pattern.permute.xlu1 %v1539_v16 }
 0x2e6   :  { %792 = vperm.xlu1 %1403, %v1651_v6   ;;  %796 = vperm.xlu0 %1426, %v1657_v9  }
 0x2ea   :  { %1404 = vset.pattern.permute.xlu1 %v1533_v59  ;;  %773 = vperm.xlu0 %1426, %v1661_v10  }
 0x2eb   :  { %451 = vperm.xlu1 %1404, %v1653_v7  }
 0x2ee   :  { %1428 = vset.pattern.permute.xlu0 %v1536_v11 }
 0x2ef   :  { %1405 = vset.pattern.permute.xlu1 %v1538_v14  ;;  %899 = vperm.xlu0 %1428, %v1661_v10  }
 0x2f0   :  { %517 = vperm.xlu1 %1405, %v1653_v7  }
 0x2f3   :  { %922 = vperm.xlu0 %1428, %v1657_v9  }
 0x2f4   :  { %1406 = vset.pattern.permute.xlu1 %v1534_v5 }
 0x2f5   :  { %580 = vperm.xlu1 %1406, %v1653_v7  }
 0x2f9   :  { %1407 = vset.pattern.permute.xlu1 %v1532_v58 }
 0x2fa   :  { %643 = vperm.xlu1 %1407, %v1653_v7  }
 0x2fe   :  { %1408 = vset.pattern.permute.xlu1 %v1535_v8 }
 0x2ff   :  { %706 = vperm.xlu1 %1408, %v1653_v7  }
 0x303   :  { %1409 = vset.pattern.permute.xlu1 %v1539_v16 }
 0x304   :  { %769 = vperm.xlu1 %1409, %v1653_v7  }
 0x306   :  { %v1735_v24 = vpop.permute.xlu0 %658  ;;  %v1737_v25 = vpop.permute.xlu1 %467 }
 0x308   :  { %1410 = vset.pattern.permute.xlu1 %v1537_v13 }
 0x309   :  { %832 = vperm.xlu1 %1410, %v1653_v7  }
 0x30b   :  { %v1747_v29 = vpop.permute.xlu1 %595  ;;  %v1749_v30 = vpop.permute.xlu0 %435 }
 0x30d   :  { %1411 = vset.pattern.permute.xlu1 %v1536_v11 }
 0x30e   :  { %895 = vperm.xlu1 %1411, %v1653_v7  }
 0x310   :  { %v1759_v33 = vpop.permute.xlu1 %721  ;;  %v630_v34 = vpop.permute.xlu0 %629 }
 0x311   :  { %v1762_v35 = vmul.f32 %v1757_v32, %v630_v34 }
 0x312   :  { %1412 = vset.pattern.permute.xlu1 %v1533_v59 }
 0x313   :  { %482 = vperm.xlu1 %1412, %v1657_v9  }
 0x315   :  { %v567_v40 = vpop.permute.xlu1 %566  ;;  %v882_v41 = vpop.permute.xlu0 %881 }
 0x316   :  { %v1779_v42 = vmul.f32 %v1771_v38, %v567_v40  ;;  %v1782_v43 = vmul.f32 %v1776_v39, %v882_v41 }
 0x317   :  { %1413 = vset.pattern.permute.xlu1 %v1534_v5 }
 0x318   :  { %607 = vperm.xlu1 %1413, %v1657_v9  }
 0x31a   :  { %v693_v46 = vpop.permute.xlu1 %692  ;;  %v1792_v47 = vpop.permute.xlu0 %472 }
 0x31b   :  { %v1795_v48 = vmul.f32 %v1790_v45, %v693_v46  ;;  %v1880_v46 = vrot.slane %v1739_v27, %v423_v61  ;;  %v1898_v61 = vrot.slane %v1739_v27, %v491_v4 }
 0x31c   :  { %1415 = vset.pattern.permute.xlu1 %v1535_v8 }
 0x31d   :  { %733 = vperm.xlu1 %1415, %v1657_v9  }
 0x31f   :  { %v819_v51 = vpop.permute.xlu1 %818  ;;  %v1805_v52 = vpop.permute.xlu0 %599 }
 0x320   :  { %v1808_v54 = vmul.f32 %v1803_v50, %v819_v51 }
 0x321   :  { %1416 = vset.pattern.permute.xlu1 %v1533_v59 }
 0x322   :  { %456 = vperm.xlu1 %1416, %v1661_v10  }
 0x324   :  { %v1812_v55 = vpop.permute.xlu1 %536  ;;  %v1814_v56 = vpop.permute.xlu0 %725 }
 0x325   :  { %2133 = vst [vmem:[#allocation11_spill] sm:$0xff] %v1814_v56 }
 0x326   :  { %1417 = vset.pattern.permute.xlu1 %v1537_v13 }
 0x327   :  { %847 = vperm.xlu1 %1417, %v1639_v1  }
 0x329   :  { %v1818_v57 = vpop.permute.xlu1 %662  ;;  %v1820_v58 = vpop.permute.xlu0 %570 }
 0x32a   :  { %2134 = vst [vmem:[#allocation12_spill] sm:$0xff] %v1818_v57 }
 0x32b   :  { %1420 = vset.pattern.permute.xlu1 %v1534_v5  ;;  %v1843_v5 = vrot.slane %v1745_v28, %v491_v4 }
 0x32c   :  { %584 = vperm.xlu1 %1420, %v1661_v10  }
 0x32e   :  { %v1824_v60 = vpop.permute.xlu1 %788  ;;  %v1826_v59 = vpop.permute.xlu0 %696 }
 0x32f   :  { %2135 = vst [vmem:[#allocation13_spill] sm:$0xff] %v1824_v60  ;;  %2136 = vst [vmem:[#allocation14_spill] sm:$0xff] %v1826_v59 }
 0x330   :  { %1421 = vset.pattern.permute.xlu1 %v1537_v13 }
 0x331   :  { %855 = vperm.xlu1 %1421, %v1651_v6  }
 0x333   :  { %v1834_v63 = vpop.permute.xlu0 %822  ;;  %v441_v1 = vpop.permute.xlu1 %440 }
 0x334   :  { %2137 = vst [vmem:[#allocation15_spill] sm:$0xff] %v1834_v63  ;;  %v1837_v2 = vmul.f32 %v1832_v62, %v441_v1 }
 0x335   :  { %1423 = vset.pattern.permute.xlu1 %v1535_v8 }
 0x336   :  { %710 = vperm.xlu1 %1423, %v1661_v10  }
 0x338   :  { %v508_v7 = vpop.permute.xlu1 %507  ;;  %v1845_v14 = vpop.permute.xlu0 %670 }
 0x339   :  { %2138 = vst [vmem:[#allocation16_spill] sm:$0xff] %v1845_v14  ;;  %v515_v16 = vmul.f32 %v1843_v5, %v508_v7 }
 0x33a   :  { %1424 = vset.pattern.permute.xlu1 %v1537_v13 }
 0x33b   :  { %859 = vperm.xlu1 %1424, %v1657_v9  }
 0x33d   :  { %v634_v17 = vpop.permute.xlu1 %633  ;;  %v1850_v18 = vpop.permute.xlu0 %851 }
 0x33e   :  { %2139 = vst [vmem:[#allocation17_spill] sm:$0xff] %v1850_v18  ;;  %v641_v8 = vmul.f32 %v1757_v32, %v634_v17 }
 0x33f   :  { %836 = vperm.xlu1 %1424, %v1661_v10  }
 0x342   :  { %v760_v21 = vpop.permute.xlu1 %759  ;;  %v1858_v22 = vpop.permute.xlu0 %503 }
 0x343   :  { %v767_v23 = vmul.f32 %v1856_v20, %v760_v21  ;;  %1427 = vset.pattern.permute.xlu1 %v1536_v11 }
 0x344   :  { %914 = vperm.xlu1 %1427, %v1645_v3  }
 0x346   :  { %v1863_v9 = vpop.permute.xlu0 %532 }
 0x347   :  { %v886_v13 = vpop.permute.xlu1 %885 }
 0x348   :  { %v1866_v34 = vmul.f32 %v1776_v39, %v886_v13  ;;  %918 = vperm.xlu1 %1427, %v1651_v6   ;;  %v1885_v6 = vld [vmem:[%s2123_s2 + $0x8] sm:$0xff] }
 0x34a   :  { %v1869_v10 = vpop.permute.xlu0 %544 }
 0x34c   :  { %v478_v28 = vpop.permute.xlu1 %477  ;;  %144 = vrot.lane.b32.xlu1 %v1593_v12, %s1528_s22 }
 0x34e   :  { %v522_v40 = vpop.permute.xlu0 %521 }
 0x34f   :  { %v525_v41 = vmul.f32 %v522_v40, %v1843_v5  ;;  %v493_v40 = vmul.f32 %v1898_v61, %v1885_v6 }
 0x351   :  { %v1875_v11 = vsel %vm141_vm1, %v515_v16, %v525_v41  ;;  %v1877_v3 = vpop.permute.xlu1 %540  ;;  %v425_v16 = vmul.f32 %v1880_v46, %v1885_v6 }
 0x353   :  { %v648_v51 = vpop.permute.xlu0 %647  ;;  %v427_v13 = vmul.f32 1.442695, %v425_v16  ;;  %v1920_v16 = vrot.slane %v1739_v27, %v617_v31 }
 0x354   :  { %v651_v1 = vmul.f32 %v648_v51, %v1757_v32 }
 0x355   :  { %1461 = vpow2.f32 %v427_v13  ;;  %v619_v13 = vmul.f32 %v1920_v16, %v1885_v6 }
 0x356   :  { %v1889_v12 = vsel %vm141_vm1, %v641_v8, %v651_v1  ;;  %v1891_v7 = vpop.permute.xlu1 %603  ;;  %v1909_v8 = vrot.slane %v1739_v27, %v554_v36  ;;  %v495_v1 = vmul.f32 1.442695, %v493_v40  ;;  %v1931_v40 = vrot.slane %v1739_v27, %v680_v44 }
 0x357   :  { %v621_v18 = vmul.f32 1.442695, %v619_v13  ;;  %v485_v13 = vsel %vm141_vm1, %v1737_v25, %v478_v28 }
 0x358   :  { %v1895_v17 = vpop.permute.xlu0 %910  ;;  %v556_v4 = vmul.f32 %v1909_v8, %v1885_v6  ;;  %1463 = vpow2.f32 %v495_v1  ;;  %v447_v1 = vmul.f32 %v1832_v62, %v1749_v30 }
 0x359   :  { %2140 = vst [vmem:[#allocation18_spill] sm:$0xff] %v1895_v17 }
 0x35a   :  { %v558_v36 = vmul.f32 1.442695, %v556_v4  ;;  %v682_v4 = vmul.f32 %v1931_v40, %v1885_v6 }
 0x35b   :  { %v1900_v21 = vpop.permute.xlu1 %666 }
 0x35c   :  { %1465 = vpow2.f32 %v558_v36  ;;  %v684_v30 = vmul.f32 1.442695, %v682_v4 }
 0x35d   :  { %v1904_v41 = vpop.permute.xlu0 %755  ;;  %1467 = vpow2.f32 %v621_v18 }
 0x35e   :  { %1469 = vpow2.f32 %v684_v30 }
 0x35f   :  { %v1462_v53 = vpop.eup %1461 }
 0x360   :  { %v1911_v51 = vpop.permute.xlu1 %729  ;;  %v932_v44 = vmul.f32 0.0, %v1462_v53  ;;  %v514_v53 = vmul.f32 %v1843_v5, %v1858_v22 }
 0x361   :  { %v1913_v37 = vpop.permute.xlu0 %784 }
 0x362   :  { %v1464_v57 = vpop.eup %1463 }
 0x365   :  { %v1922_v49 = vpop.permute.xlu1 %792  ;;  %v1924_v0 = vpop.permute.xlu0 %796 }
 0x366   :  { %2141 = vst [vmem:[#allocation19_spill] sm:$0xff] %v1924_v0  ;;  %v1943_v0 = vrot.slane %v1739_v27, %v743_v19 }
 0x368   :  { %v745_v18 = vmul.f32 %v1943_v0, %v1885_v6 }
 0x369   :  { %v774_v15 = vpop.permute.xlu0 %773 }
 0x36a   :  { %v777_v31 = vmul.f32 %v774_v15, %v1856_v20  ;;  %v452_v17 = vpop.permute.xlu1 %451  ;;  %v1449_v15 = vld [vmem:[#allocation6 + $0xa0] sm:$0xff]  }
 0x36b   :  { %v459_v63 = vmul.f32 %v452_v17, %v1832_v62  ;;  %1350 = vmatpush3.bf16.msra.mxu1 %v1449_v15 }
 0x36c   :  { %v1940_v60 = vsel %vm141_vm1, %v767_v23, %v777_v31  ;;  %v1450_v23 = vld [vmem:[#allocation6 + $0xa8] sm:$0xff]  }
 0x36d   :  { %v461_v36 = vsel %vm141_vm1, %v447_v1, %v459_v63  ;;  %v2142_v1 = vmov 0.0  }
 0x36e   :  { %v936_v56 = vadd.f32 %v932_v44, %v461_v36  ;;  %v900_v59 = vpop.permute.xlu0 %899  ;;  %1351 = vmatprep.subr.bf16.mxu1 %v2142_v1 }
 0x36f   :  { %v903_v17 = vmul.f32 %v900_v59, %v1776_v39  ;;  %v518_v14 = vpop.permute.xlu1 %517  ;;  %v2143_v59 = vsub.s32 6, %v1607_v26  ;;  %1352 = vmatpush3.bf16.msra.mxu1 %v1450_v23 }
 0x370   :  { %v1951_v19 = vmul.f32 %v936_v56, %v485_v13  ;;  %v952_v63 = vmul.f32 %v1464_v57, %v936_v56  ;;  %v524_v31 = vmul.f32 %v518_v14, %v1843_v5  ;;  %v1451_v56 = vld [vmem:[#allocation6 + $0xb0] sm:$0xff]   ;;  %v1466_v57 = vpop.eup %1465  ;;  %v547_v5 = vsel %vm141_vm1, %v1863_v9, %v1877_v3  ;;  %1353 = vmatprep.subr.bf16.mxu1 %v2142_v1  ;;  %v1452_v3 = vld [vmem:[#allocation6 + $0xb8] sm:$0xff]  }
 0x371   :  { %v1959_v25 = vsel %vm141_vm1, %v1866_v34, %v903_v17  ;;  %v1964_v28 = vrot.slane %v1739_v27, %v2143_v59  ;;  %v747_v34 = vmul.f32 1.442695, %v745_v18  ;;  %v2144_v17 = vsub.s32 7, %v1607_v26 }
 0x372   :  { %v526_v22 = vsel %vm141_vm1, %v514_v53, %v524_v31  ;;  %v1468_v53 = vpop.eup %1467 }
 0x373   :  { %v956_v4 = vadd.f32 %v952_v63, %v526_v22  ;;  %v808_v13 = vmul.f32 %v1964_v28, %v1885_v6  ;;  %v1979_v30 = vrot.slane %v1739_v27, %v2144_v17  ;;  %1354 = vmatpush3.bf16.msra.mxu1 %v1451_v56  ;;  %1471 = vpow2.f32 %v747_v34 }
 0x374   :  { %v581_v14 = vpop.permute.xlu1 %580  ;;  %1355 = vmatprep.subr.bf16.mxu1 %v2142_v1  ;;  %v610_v63 = vsel %vm141_vm1, %v1747_v29, %v1891_v7  ;;  %v673_v29 = vsel %vm141_vm1, %v1735_v24, %v1900_v21  ;;  %v766_v24 = vmul.f32 %v1856_v20, %v1904_v41  ;;  %v419_v41 = vld [vmem:[%s2123_s2 + $0x10] sm:$0xff] }
 0x375   :  { %v1971_v44 = vmul.f32 %v956_v4, %v547_v5  ;;  %v587_v36 = vmul.f32 %v581_v14, %v1771_v38  ;;  %v972_v15 = vmul.f32 %v1466_v57, %v956_v4  ;;  %v810_v18 = vmul.f32 1.442695, %v808_v13  ;;  %v1470_v4 = vpop.eup %1469 }
 0x377   :  { %v589_v9 = vsel %vm141_vm1, %v1779_v42, %v587_v36  ;;  %v871_v42 = vmul.f32 %v1979_v30, %v1885_v6  ;;  %1356 = vmatpush3.bf16.msra.mxu1 %v1452_v3  ;;  %1473 = vpow2.f32 %v810_v18  ;;  %v799_v3 = vsel %vm141_vm1, %v1913_v37, %v1922_v49 }
 0x378   :  { %v976_v23 = vadd.f32 %v972_v15, %v589_v9  ;;  %v426_v37 = vmul.f32 %v1880_v46, %v419_v41  ;;  %v620_v46 = vmul.f32 %v1920_v16, %v419_v41 }
 0x379   :  { %v644_v31 = vpop.permute.xlu1 %643  ;;  %v873_v56 = vmul.f32 1.442695, %v871_v42 }
 0x37a   :  { %v1987_v26 = vmul.f32 %v976_v23, %v610_v63  ;;  %v650_v27 = vmul.f32 %v644_v31, %v1757_v32  ;;  %v992_v59 = vmul.f32 %v1468_v53, %v976_v23 }
 0x37b   :  { %1475 = vpow2.f32 %v873_v56 }
 0x37c   :  { %v652_v1 = vsel %vm141_vm1, %v1762_v35, %v650_v27  ;;  %v736_v35 = vsel %vm141_vm1, %v1759_v33, %v1911_v51 }
 0x37d   :  { %v996_v22 = vadd.f32 %v992_v59, %v652_v1  ;;  %v1472_v34 = vpop.eup %1471 }
 0x37e   :  { %v707_v7 = vpop.permute.xlu1 %706 }
 0x37f   :  { %v1997_v57 = vmul.f32 %v996_v22, %v673_v29  ;;  %v713_v32 = vmul.f32 %v707_v7, %v1790_v45  ;;  %v1012_v5 = vmul.f32 %v1470_v4, %v996_v22  ;;  %v429_v22 = vmul.f32 1.442695, %v426_v37 }
 0x380   :  { %v494_v4 = vmul.f32 %v1898_v61, %v419_v41  ;;  %v557_v29 = vmul.f32 %v1909_v8, %v419_v41  ;;  %v872_v37 = vmul.f32 %v1979_v30, %v419_v41  ;;  %v2145_v30 = vld [vmem:[#allocation16_spill] sm:$0xff] }
 0x381   :  { %v715_v6 = vsel %vm141_vm1, %v1795_v48, %v713_v32  ;;  %v1474_v48 = vpop.eup %1473  ;;  %1477 = vpow2.f32 %v429_v22 }
 0x382   :  { %v1016_v14 = vadd.f32 %v1012_v5, %v715_v6  ;;  %v497_v7 = vmul.f32 1.442695, %v494_v4  ;;  %v560_v56 = vmul.f32 1.442695, %v557_v29  ;;  %v623_v5 = vmul.f32 1.442695, %v620_v46 }
 0x383   :  { %v770_v36 = vpop.permute.xlu1 %769 }
 0x384   :  { %v2007_v21 = vmul.f32 %v1016_v14, %v736_v35  ;;  %v776_v15 = vmul.f32 %v770_v36, %v1856_v20  ;;  %v1032_v13 = vmul.f32 %v1472_v34, %v1016_v14  ;;  %1479 = vpow2.f32 %v497_v7 }
 0x385   :  { %v1476_v31 = vpop.eup %1475  ;;  %1481 = vpow2.f32 %v560_v56  ;;  %v683_v14 = vmul.f32 %v1931_v40, %v419_v41  ;;  %v875_v7 = vmul.f32 1.442695, %v872_v37 }
 0x386   :  { %v778_v17 = vsel %vm141_vm1, %v766_v24, %v776_v15  ;;  %1483 = vpow2.f32 %v623_v5 }
 0x387   :  { %v1036_v9 = vadd.f32 %v1032_v13, %v778_v17  ;;  %v686_v16 = vmul.f32 1.442695, %v683_v14  ;;  %v746_v17 = vmul.f32 %v1943_v0, %v419_v41 }
 0x388   :  { %v833_v23 = vpop.permute.xlu1 %832 }
 0x389   :  { %v2014_v53 = vmul.f32 %v1036_v9, %v799_v3  ;;  %v839_v33 = vmul.f32 %v833_v23, %v1803_v50  ;;  %v1052_v51 = vmul.f32 %v1474_v48, %v1036_v9  ;;  %1485 = vpow2.f32 %v686_v16 }
 0x38a   :  { %v749_v0 = vmul.f32 1.442695, %v746_v17 }
 0x38b   :  { %v841_v20 = vsel %vm141_vm1, %v1808_v54, %v839_v33  ;;  %v1478_v32 = vpop.eup %1477  ;;  %v809_v33 = vmul.f32 %v1964_v28, %v419_v41  ;;  %v2146_v41 = vld [vmem:[#allocation12_spill] sm:$0xff] }
 0x38c   :  { %v2022_v63 = vadd.f32 %v1052_v51, %v841_v20  ;;  %v933_v61 = vmul.f32 0.0, %v1478_v32  ;;  %v578_v51 = vmul.f32 %v1771_v38, %v1820_v58  ;;  %1487 = vpow2.f32 %v749_v0  ;;  %v2149_v0 = vld [vmem:[#allocation19_spill] sm:$0xff] }
 0x38d   :  { %v896_v18 = vpop.permute.xlu1 %895  ;;  %v674_v32 = vsel %vm141_vm1, %v2146_v41, %v2145_v30  ;;  %v2152_v30 = vld [vmem:[#allocation17_spill] sm:$0xff] }
 0x38e   :  { %v902_v27 = vmul.f32 %v896_v18, %v1776_v39  ;;  %v1072_v49 = vmul.f32 %v1476_v31, %v2022_v63  ;;  %v1480_v35 = vpop.eup %1479 }
 0x38f   :  { %v1482_v9 = vpop.eup %1481 }
 0x390   :  { %v904_v59 = vsel %vm141_vm1, %v1782_v43, %v902_v27  ;;  %v1484_v27 = vpop.eup %1483 }
 0x391   :  { %v2029_v42 = vadd.f32 %v1072_v49, %v904_v59  ;;  %v812_v49 = vmul.f32 1.442695, %v809_v33 }
 0x392   :  { %v483_v1 = vpop.permute.xlu1 %482 }
 0x393   :  { %v486_v36 = vsel %vm141_vm1, %v1792_v47, %v483_v1  ;;  %1489 = vpow2.f32 %v812_v49  ;;  %v1486_v46 = vpop.eup %1485 }
 0x394   :  { %1491 = vpow2.f32 %v875_v7 }
 0x396   :  { %v1488_v17 = vpop.eup %1487 }
 0x397   :  { %v608_v54 = vpop.permute.xlu1 %607 }
 0x398   :  { %v611_v28 = vsel %vm141_vm1, %v1805_v52, %v608_v54 }
 0x39c   :  { %v2033_v39 = vpop.permute.xlu1 %733 }
 0x3a1   :  { %v457_v43 = vpop.permute.xlu1 %456 }
 0x3a2   :  { %v460_v6 = vmul.f32 %v457_v43, %v1832_v62 }
 0x3a4   :  { %v462_v34 = vsel %vm141_vm1, %v1837_v2, %v460_v6  ;;  %v548_v2 = vsel %vm141_vm1, %v1812_v55, %v1869_v10  ;;  %v2147_v6 = vld [vmem:[#allocation14_spill] sm:$0xff] }
 0x3a5   :  { %v937_v8 = vadd.f32 %v933_v61, %v462_v34  ;;  %v704_v14 = vmul.f32 %v1790_v45, %v2147_v6 }
 0x3a6   :  { %v2042_v24 = vpop.permute.xlu1 %847 }
 0x3a7   :  { %v941_v15 = vmul.f32 %v937_v8, %v486_v36  ;;  %v953_v13 = vmul.f32 %v1480_v35, %v937_v8 }
 0x3a9   :  { %v942_v62 = vadd.f32 %v941_v15, %v1951_v19  ;;  %v957_v40 = vadd.f32 %v953_v13, %v1875_v11 }
 0x3ab   :  { %v943_v48 = vrot.slane %v942_v62, 4  ;;  %v961_v3 = vmul.f32 %v957_v40, %v548_v2  ;;  %v973_v47 = vmul.f32 %v1482_v9, %v957_v40  ;;  %v585_v23 = vpop.permute.xlu1 %584 }
 0x3ac   :  { %v588_v19 = vmul.f32 %v585_v23, %v1771_v38 }
 0x3ad   :  { %v944_v20 = vadd.f32 %v943_v48, %v942_v62  ;;  %v962_v11 = vadd.f32 %v961_v3, %v1971_v44  ;;  %v2148_v62 = vld [vmem:[#allocation11_spill] sm:$0xff] }
 0x3ae   :  { %v590_v31 = vsel %vm141_vm1, %v578_v51, %v588_v19  ;;  %v737_v40 = vsel %vm141_vm1, %v2148_v62, %v2033_v39  ;;  %v1490_v51 = vpop.eup %1489  ;;  %v2150_v19 = vld [vmem:[#allocation13_spill] sm:$0xff] }
 0x3af   :  { %v945_v18 = vrot.slane %v944_v20, 2  ;;  %v963_v55 = vrot.slane %v962_v11, 4  ;;  %v977_v10 = vadd.f32 %v973_v47, %v590_v31  ;;  %v1492_v7 = vpop.eup %1491 }
 0x3b0   :  { %v856_v58 = vpop.permute.xlu1 %855 }
 0x3b1   :  { %v946_v59 = vadd.f32 %v945_v18, %v944_v20  ;;  %v964_v1 = vadd.f32 %v963_v55, %v962_v11  ;;  %v981_v38 = vmul.f32 %v977_v10, %v611_v28  ;;  %v993_v22 = vmul.f32 %v1484_v27, %v977_v10  ;;  %v2151_v27 = vld [vmem:[#allocation15_spill] sm:$0xff] }
 0x3b2   :  { %v800_v20 = vsel %vm141_vm1, %v2150_v19, %v2149_v0  ;;  %v830_v37 = vmul.f32 %v1803_v50, %v2151_v27 }
 0x3b3   :  { %v947_v4 = vrot.slane %v946_v59, 1  ;;  %v965_v44 = vrot.slane %v964_v1, 2  ;;  %v982_v29 = vadd.f32 %v981_v38, %v1987_v26  ;;  %v997_v56 = vadd.f32 %v993_v22, %v1889_v12 }
 0x3b5   :  { %v948_v43 = vadd.f32 %v947_v4, %v946_v59  ;;  %v966_v52 = vadd.f32 %v965_v44, %v964_v1  ;;  %v983_v54 = vrot.slane %v982_v29, 4  ;;  %v711_v5 = vpop.permute.xlu1 %710  ;;  %v1001_v61 = vmul.f32 %v997_v56, %v674_v32 }
 0x3b6   :  { %v1013_v34 = vmul.f32 %v1486_v46, %v997_v56  ;;  %v714_v26 = vmul.f32 %v711_v5, %v1790_v45 }
 0x3b7   :  { %949 = vst [vmem:[#allocation5] sm:$0x1] %v948_v43  ;;  %v967_v8 = vrot.slane %v966_v52, 1  ;;  %v984_v35 = vadd.f32 %v983_v54, %v982_v29  ;;  %v1002_v12 = vadd.f32 %v1001_v61, %v1997_v57  ;;  %v2153_v61 = vld [vmem:[#allocation18_spill] sm:$0xff] }
 0x3b8   :  { %v716_v36 = vsel %vm141_vm1, %v704_v14, %v714_v26 }
 0x3b9   :  { %v968_v16 = vadd.f32 %v967_v8, %v966_v52  ;;  %v985_v15 = vrot.slane %v984_v35, 2  ;;  %v1017_v13 = vadd.f32 %v1013_v34, %v716_v36  ;;  %v1003_v9 = vrot.slane %v1002_v12, 4 }
 0x3ba   :  { %v860_v2 = vpop.permute.xlu1 %859 }
 0x3bb   :  { %969 = vst [vmem:[#allocation5 + $0x1] sm:$0x1] %v968_v16  ;;  %v986_v45 = vadd.f32 %v985_v15, %v984_v35  ;;  %v1021_v48 = vmul.f32 %v1017_v13, %v737_v40  ;;  %v1033_v3 = vmul.f32 %v1488_v17, %v1017_v13  ;;  %v1004_v47 = vadd.f32 %v1003_v9, %v1002_v12  ;;  %v2154_v17 = vld [vmem:[#allocation9_spill] sm:$0xff] }
 0x3bd   :  { %v987_v23 = vrot.slane %v986_v45, 1  ;;  %v1022_v57 = vadd.f32 %v1021_v48, %v2007_v21  ;;  %v1037_v33 = vadd.f32 %v1033_v3, %v1940_v60  ;;  %v1005_v11 = vrot.slane %v1004_v47, 2 }
 0x3be   :  { %v837_v31 = vpop.permute.xlu1 %836  ;;  %v862_v60 = vsel %vm141_vm1, %v2042_v24, %v856_v58 }
 0x3bf   :  { %v988_v39 = vadd.f32 %v987_v23, %v986_v45  ;;  %v1023_v18 = vrot.slane %v1022_v57, 4  ;;  %v1041_v55 = vmul.f32 %v1037_v33, %v800_v20  ;;  %v1053_v10 = vmul.f32 %v1490_v51, %v1037_v33  ;;  %v1262_v20 = vld [vmem:[%s2123_s2 + $0x6] ss:$0 sm:$0xff] }
 0x3c0   :  { %v1006_v49 = vadd.f32 %v1005_v11, %v1004_v47  ;;  %v840_v28 = vmul.f32 %v837_v31, %v1803_v50  ;;  %v1060_v56 = vmul.f32 %v2022_v63, %v862_v60  ;;  %v863_v50 = vsel %vm141_vm1, %v2152_v30, %v860_v2  ;;  %v2155_v31 = vld [vmem:[#allocation10_spill] sm:$0xff]  ;;  %v1501_v60 = vld [vmem:[%s2121_s0] sm:$0xff] }
 0x3c1   :  { %989 = vst [vmem:[#allocation5 + $0x2] sm:$0x1] %v988_v39  ;;  %v1024_v21 = vadd.f32 %v1023_v18, %v1022_v57  ;;  %v1042_v59 = vadd.f32 %v1041_v55, %v2014_v53  ;;  %v923_v53 = vpop.permute.xlu0 %922  ;;  %v1096_v39 = vmul.f32 %v1262_v20, %v2155_v31 }
 0x3c2   :  { %v1007_v1 = vrot.slane %v1006_v49, 1  ;;  %v842_v38 = vsel %vm141_vm1, %v830_v37, %v840_v28 }
 0x3c3   :  { %v1025_v22 = vrot.slane %v1024_v21, 2  ;;  %v1043_v4 = vrot.slane %v1042_v59, 4  ;;  %v1057_v44 = vadd.f32 %v1053_v10, %v842_v38  ;;  %v915_v29 = vpop.permute.xlu1 %914  ;;  %v1502_v38 = vld [vmem:[%s2121_s0 + $0x8] sm:$0xff] }
 0x3c4   :  { %v1008_v46 = vadd.f32 %v1007_v1, %v1006_v49  ;;  %v926_v14 = vsel %vm141_vm1, %v915_v29, %v923_v53 }
 0x3c5   :  { %v1026_v41 = vadd.f32 %v1025_v22, %v1024_v21  ;;  %v1044_v32 = vadd.f32 %v1043_v4, %v1042_v59  ;;  %v1061_v24 = vmul.f32 %v1057_v44, %v863_v50  ;;  %v1073_v58 = vmul.f32 %v1492_v7, %v1057_v44  ;;  %v1268_v44 = vld [vmem:[%s2123_s2 + $0x1a] ss:$0 sm:$0xff] }
 0x3c6   :  { %1009 = vst [vmem:[#allocation5 + $0x3] sm:$0x1] %v1008_v46 }
 0x3c7   :  { %v1027_v43 = vrot.slane %v1026_v41, 1  ;;  %v1045_v52 = vrot.slane %v1044_v32, 2  ;;  %v1062_v54 = vadd.f32 %v1061_v24, %v1060_v56  ;;  %v1077_v5 = vadd.f32 %v1073_v58, %v1959_v25  ;;  %v919_v6 = vpop.permute.xlu1 %918 }
 0x3c8   :  { %v925_v63 = vsel %vm141_vm1, %v2153_v61, %v919_v6  ;;  %v1269_v61 = vld [vmem:[%s2123_s2 + $0x18] ss:$0 sm:$0xff] }
 0x3c9   :  { %v1028_v34 = vadd.f32 %v1027_v43, %v1026_v41  ;;  %v1046_v26 = vadd.f32 %v1045_v52, %v1044_v32  ;;  %v1063_v8 = vrot.slane %v1062_v54, 4  ;;  %v1081_v35 = vmul.f32 %v1077_v5, %v926_v14 }
 0x3ca   :  { %v1080_v12 = vmul.f32 %v2029_v42, %v925_v63 }
 0x3cb   :  { %1029 = vst [vmem:[#allocation5 + $0x4] sm:$0x1] %v1028_v34  ;;  %v1047_v36 = vrot.slane %v1046_v26, 1  ;;  %v1064_v16 = vadd.f32 %v1063_v8, %v1062_v54  ;;  %v145_v15 = vpop.permute.xlu1 %144 }
 0x3cc   :  { %v1082_v13 = vadd.f32 %v1081_v35, %v1080_v12  ;;  %v147_v25 = vsel %vm141_vm1, %v145_v15, %v2154_v17 }
 0x3cd   :  { %v1048_v62 = vadd.f32 %v1047_v36, %v1046_v26  ;;  %v1065_v40 = vrot.slane %v1064_v16, 2  ;;  %v1098_v9 = vsub.f32 0.0, %v147_v25  ;;  %v1270_v26 = vld [vmem:[%s2123_s2 + $0x19] ss:$0 sm:$0xff] }
 0x3ce   :  { %v1083_v2 = vrot.slane %v1082_v13, 4 }
 0x3cf   :  { %1049 = vst [vmem:[#allocation5 + $0x5] sm:$0x1] %v1048_v62  ;;  %v1066_v45 = vadd.f32 %v1065_v40, %v1064_v16  ;;  %v1099_v48 = vmul.f32 1.442695, %v1098_v9 }
 0x3d0   :  { %v1084_v3 = vadd.f32 %v1083_v2, %v1082_v13 }
 0x3d1   :  { %v1067_v47 = vrot.slane %v1066_v45, 1  ;;  %1493 = vpow2.f32 %v1099_v48 }
 0x3d2   :  { %v1085_v23 = vrot.slane %v1084_v3, 2 }
 0x3d3   :  { %v1068_v42 = vadd.f32 %v1067_v47, %v1066_v45 }
 0x3d4   :  { %v1086_v57 = vadd.f32 %v1085_v23, %v1084_v3 }
 0x3d5   :  { %1069 = vst [vmem:[#allocation5 + $0x6] sm:$0x1] %v1068_v42 }
 0x3d6   :  { %v1087_v33 = vrot.slane %v1086_v57, 1 }
 0x3d8   :  { %v1088_v51 = vadd.f32 %v1087_v33, %v1086_v57 }
 0x3da   :  { %1089 = vst [vmem:[#allocation5 + $0x7] sm:$0x1] %v1088_v51 }
 0x3db   :  { %v1494_v0 = vpop.eup %1493 }
 0x3dc   :  { %v1101_v19 = vadd.f32 1.0, %v1494_v0 }
 0x3de   :  { %1495 = vrcp.f32 %v1101_v19 }
 0x3e1   :  { %v1090_v11 = vld [vmem:[#allocation5] sm:$0xff] }
 0x3e2   :  { %v1097_v10 = vadd.f32 %v1096_v39, %v1090_v11 }
 0x3e8   :  { %v1496_v18 = vpop.eup %1495 }
 0x3e9   :  { %v1103_v55 = vmul.f32 %v1496_v18, %v147_v25 }
 0x3eb   :  { %v1104_v27 = vmul.f32 %v1103_v55, %v1097_v10 }
 0x3ed   :  { %1106 = vrot.lane.b32.xlu0 %v1104_v27, %s1528_s22 }
 0x45f   :  { %v1107_v37 = vpop.permute.xlu0 %1106 }
 0x460   :  { %v1109_v49 = vpack.c.bf16 %v1107_v37, %v1104_v27 }
 0x462   :  { %1358 = vmatmul.mubr.msk.bf16.vlgmr.msra.gmra.mrb[4].mxu1 %vm141_vm1, %v1109_v49 }
 0x535   :  { %v1179_v28 = vpop.f32.mrb[4].mxu1 }
 0x536   :  { %v1180_v21 = vadd.f32 %v1501_v60, %v1179_v28  ;;  %v1359_v59 = vpop.f32.mrb[5].mxu1 }
 0x537   :  { %v1182_v1 = vpop.f32.mrb[6].mxu1 }
 0x538   :  { %v1183_v22 = vadd.f32 %v1502_v38, %v1182_v1  ;;  %1186 = vadd.xlane.f32.xlu1 %v1180_v21  ;;  %v1360_v4 = vpop.f32.mrb[7].mxu1 }
 0x53a   :  { %1188 = vadd.xlane.f32.xlu0 %v1183_v22 }
 0x5c5   :  { %v1187_v29 = vpop.xlane.xlu1 %1186 }
 0x5c6   :  { %v1190_v7 = vmul.f32 0.03125, %v1187_v29 }
 0x5c7   :  { %v1189_v56 = vpop.xlane.xlu0 %1188 }
 0x5c8   :  { %v1197_v46 = vmul.f32 %v1268_v44, %v1190_v7  ;;  %v1191_v30 = vmul.f32 0.03125, %v1189_v56 }
 0x5ca   :  { %v1198_v50 = vmul.f32 %v1268_v44, %v1191_v30  ;;  %v1199_v41 = vsub.f32 %v1180_v21, %v1197_v46 }
 0x5cc   :  { %v1201_v32 = vmul.f32 %v1199_v41, %v1199_v41  ;;  %v1200_v24 = vsub.f32 %v1183_v22, %v1198_v50 }
 0x5ce   :  { %1203 = vadd.xlane.f32.xlu0 %v1201_v32  ;;  %v1202_v58 = vmul.f32 %v1200_v24, %v1200_v24 }
 0x5d0   :  { %1205 = vadd.xlane.f32.xlu1 %v1202_v58 }
 0x65b   :  { %v1204_v53 = vpop.xlane.xlu0 %1203 }
 0x65c   :  { %v1207_v43 = vmul.f32 0.03125, %v1204_v53 }
 0x65d   :  { %v1206_v52 = vpop.xlane.xlu1 %1205 }
 0x65e   :  { %v1209_v54 = vadd.f32 1e-05, %v1207_v43  ;;  %v1208_v5 = vmul.f32 0.03125, %v1206_v52 }
 0x660   :  { %1497 = vrsqrt.f32 %v1209_v54  ;;  %v1210_v6 = vadd.f32 1e-05, %v1208_v5 }
 0x662   :  { %1499 = vrsqrt.f32 %v1210_v6 }
 0x66a   :  { %v1498_v14 = vpop.eup %1497 }
 0x66b   :  { %v1213_v63 = vmul.f32 %v1498_v14, %v1199_v41 }
 0x66c   :  { %v1500_v34 = vpop.eup %1499 }
 0x66d   :  { %v1220_v8 = vmul.f32 %v1269_v61, %v1213_v63  ;;  %v1214_v35 = vmul.f32 %v1500_v34, %v1200_v24 }
 0x66f   :  { %v1227_v12 = vadd.f32 %v1270_v26, %v1220_v8  ;;  %v1221_v36 = vmul.f32 %v1269_v61, %v1214_v35 }
 0x671   :  { %1229 = vst [vmem:[%s2124_s3] sm:$0xff] %v1227_v12  ;;  %v1228_v16 = vadd.f32 %v1270_v26, %v1221_v36 }
 0x673   :  { %1230 = vst [vmem:[%s2124_s3 + $0x8] sm:$0xff] %v1228_v16 }
 0x674   :  { %1235 = vsyncpa [#allocation7], 1 }

</bundles_post_ra>
